<compile_context>
chip_gen: v7x
topology: tpu7x:2x2x1
jax: 0.10.0
libtpu: 0.0.40
codegen_flags: <defaults>
</compile_context>

<pallas_src>
import functools

import jax
import jax.numpy as jnp
from jax.experimental import pallas as pl
from jax.experimental.pallas import tpu as pltpu


# Tiny synthetic config (module args: dropout=0.1, in_channels=1, mlp_input=4,
# mlp_output_dims=[16, 8], output_size=3, conv_layers=[(4, 3, 1)],
# global_pooling='mean'; synthetic Whisper encoder: d_model=32, 2 layers, 2 heads).
CFG = dict(B=2, n_mels=8, L=16, D=32, heads=2, ffn=64, n_layers=2,
           conv_out=4, conv_k=3, mlp_dims=(16, 8), output_size=3)


def _mm(a, b):
    """MXU matmul: bf16 operands, f32 accumulation."""
    return jnp.dot(a.astype(jnp.bfloat16), b.astype(jnp.bfloat16),
                   preferred_element_type=jnp.float32)


def _bmm(a, b, dims):
    """Batched (leading batch dim) dot_general: bf16 operands, f32 accumulation."""
    return jax.lax.dot_general(a.astype(jnp.bfloat16), b.astype(jnp.bfloat16),
                               dims, preferred_element_type=jnp.float32)


def _layer_norm(v, g, b):
    mu = jnp.mean(v, axis=-1, keepdims=True)
    vc = v - mu
    var = jnp.mean(vc * vc, axis=-1, keepdims=True)
    return vc * jax.lax.rsqrt(var + 1e-5) * g + b


# --------------------------------------------------------------------------
# One fused kernel: conv stem -> encoder layers (grid axis) -> head
# --------------------------------------------------------------------------

def _fused_kernel(pe_ref, po_ref, w1s_ref, b1s_ref, w2s_ref, b2s_ref, pos_ref,
                  ln_ref, wqkv_ref, bqkv_ref, wo_ref, bo_ref,
                  wf1_ref, bf1_ref, wf2_ref, bf2_ref, lnf_ref,
                  wc_ref, bc_ref, m0w_ref, m0b_ref, m1w_ref, m1b_ref,
                  m2w_ref, m2b_ref,
                  o_ref, state_ref, *, B, T, H, conv_k):
    l = pl.program_id(0)
    D = state_ref.shape[-1]
    Dh = D // H

    # ---------------- Whisper conv stem (first grid step only) ----------------
    @pl.when(l == 0)
    def _stem():
        # conv1 (k=3, s=1, p=1) + GELU, evaluated separately for even/odd output
        # positions so conv2's stride-2 gather becomes plain accumulating matmuls.
        # TODO(synk): HF Whisper uses exact erf-GELU; tanh-approx used (|diff|<1e-3).
        ev = jax.nn.gelu(_mm(pe_ref[...], w1s_ref[...]) + b1s_ref[...],
                         approximate=True)                     # h1 at position 2t
        od = jax.nn.gelu(_mm(po_ref[...], w1s_ref[...]) + b1s_ref[...],
                         approximate=True)                     # h1 at position 2t+1
        # h1 at position 2t-1 == odd shifted down one row within each batch element
        # (row 0 of each batch is conv2's zero padding).
        rows = jax.lax.broadcasted_iota(jnp.int32, (B * T, 1), 0)
        od_prev = jnp.where((rows % T) == 0, 0.0,
                            pltpu.roll(od, shift=1, axis=0))
        # conv2 (k=3, s=2, p=1): three accumulating (B*T,D) x (D,D) matmuls.
        h2 = (_mm(od_prev, w2s_ref[0]) + _mm(ev, w2s_ref[1]) + _mm(od, w2s_ref[2])
              + b2s_ref[...])
        h2 = jax.nn.gelu(h2, approximate=True)
        x0 = h2.reshape(B, T, D) + pos_ref[...][None, :, :]    # + pos-emb, bcast B
        state_ref[...] = x0.reshape(B * T, D)

    # ---------------- transformer encoder layer l ----------------
    ln = ln_ref[0]                                 # (4, D): ln1_g, ln1_b, ln2_g, ln2_b
    x = state_ref[...]                             # (B*T, D) residual stream (VMEM)

    # self-attention (pre-LN; packed QKV; q-scale folded into wq/bq at init)
    h = _layer_norm(x, ln[0:1, :], ln[1:2, :])
    qkv = _mm(h, wqkv_ref[0]) + bqkv_ref[0]        # (B*T, 3D)
    wo = wo_ref[0]
    attn = jnp.zeros((B * T, D), jnp.float32)
    for hd in range(H):                            # static unroll over heads
        qh = qkv[:, hd * Dh:(hd + 1) * Dh].reshape(B, T, Dh)
        kh = qkv[:, D + hd * Dh:D + (hd + 1) * Dh].reshape(B, T, Dh)
        vh = qkv[:, 2 * D + hd * Dh:2 * D + (hd + 1) * Dh].reshape(B, T, Dh)
        s = _bmm(qh, kh, (((2,), (2,)), ((0,), (0,))))               # (B, T, T)
        p = jnp.exp(s - jnp.max(s, axis=-1, keepdims=True))
        p = p * pl.reciprocal(jnp.sum(p, axis=-1, keepdims=True), approx=True)
        oh = _bmm(p, vh, (((2,), (1,)), ((0,), (0,))))               # (B, T, Dh)
        # out-projection accumulated per head (no lane concat of head outputs)
        attn = attn + _mm(oh.reshape(B * T, Dh), wo[hd * Dh:(hd + 1) * Dh, :])
    x = x + attn + bo_ref[0]

    # feed-forward
    h = _layer_norm(x, ln[2:3, :], ln[3:4, :])
    f = jax.nn.gelu(_mm(h, wf1_ref[0]) + bf1_ref[0], approximate=True)
    x = x + _mm(f, wf2_ref[0]) + bf2_ref[0]
    state_ref[...] = x

    # ---------------- final LN + classification head (last grid step) ----------
    @pl.when(l == pl.num_programs(0) - 1)
    def _head():
        lnf = lnf_ref[...]                                     # (2, D): gamma; beta
        lh = _layer_norm(x, lnf[0:1, :], lnf[1:2, :])          # last_hidden_state
        pooled = jnp.mean(lh.reshape(B, T, D), axis=1)         # torch.mean(dim=1)

        C = wc_ref.shape[0]
        Lc = D - conv_k + 1            # Conv1d(1, C, k, stride=1, no pad) out length
        Lm = Lc // 2                   # MaxPool1d(2, 2) output length
        lidx = jax.lax.broadcasted_iota(jnp.int32, (B, Lc - 1), 1)
        keep = ((lidx % 2) == 0) & (lidx < 2 * Lm)             # MaxPool window starts
        feats = []
        for c in range(C):             # Conv1d + folded BN + ReLU + MaxPool + mean
            yc = bc_ref[c:c + 1, 0:1]                          # folded BN shift
            for j in range(conv_k):
                yc = yc + pooled[:, j:j + Lc] * wc_ref[c:c + 1, j:j + 1]
            yc = jnp.maximum(yc, 0.0)                          # ReLU (BN scale in w)
            pairmax = jnp.maximum(yc[:, 0:Lc - 1], yc[:, 1:Lc])
            ssum = jnp.sum(jnp.where(keep, pairmax, 0.0), axis=-1, keepdims=True)
            feats.append(ssum * (1.0 / Lm))                    # MaxPool -> mean(-1)
        g = jnp.concatenate(feats, axis=-1)                    # (B, C); Dropout = id

        # MLPBase head.  TODO(synk): MLPBase assumed Linear+ReLU(+Dropout) stack.
        hh = jnp.maximum(_mm(g, m0w_ref[...]) + m0b_ref[...], 0.0)
        hh = jnp.maximum(_mm(hh, m1w_ref[...]) + m1b_ref[...], 0.0)
        logits = _mm(hh, m2w_ref[...]) + m2b_ref[...]
        o_ref[...] = logits.astype(o_ref.dtype)


# ------------------------------- wrapper -----------------------------------

def cnn1d_net_whisper_forward(p, x_mel, cfg=CFG):
    B, n_mels, L = x_mel.shape
    assert L % 2 == 0, "even frame count assumed (Whisper conv2 stride 2)"
    T = L // 2
    D = p["pos_emb"].shape[-1]
    NL = p["ln"].shape[0]
    H = cfg["heads"]
    k = cfg["conv_k"]
    nout = p["mlp_w2"].shape[1]

    # im2col of the raw mel input (one XLA fusion before the single launch),
    # pre-split into even / odd conv1 output positions.
    xp = jnp.pad(x_mel.astype(jnp.float32), ((0, 0), (0, 0), (1, 1)))
    cols = jnp.stack([xp[:, :, j:j + L] for j in range(3)], axis=-1)   # (B, C, L, 3)
    patches = cols.transpose(0, 2, 1, 3).reshape(B, L, n_mels * 3)     # (B, L, C*3)
    pe = patches[:, 0::2, :].reshape(B * T, n_mels * 3)
    po = patches[:, 1::2, :].reshape(B * T, n_mels * 3)

    kern = functools.partial(_fused_kernel, B=B, T=T, H=H, conv_k=k)

    def full(shape):
        nd = len(shape)

        def idx(l):
            return (0,) * nd
        return pl.BlockSpec(tuple(shape), idx)

    def per_layer(shape):          # shape excludes the leading layer dim
        nd = len(shape)

        def idx(l):
            return (l,) + (0,) * nd
        return pl.BlockSpec((1,) + tuple(shape), idx)

    return pl.pallas_call(
        kern,
        out_shape=jax.ShapeDtypeStruct((B, nout), jnp.float32),
        grid=(NL,),
        in_specs=[
            full(pe.shape), full(po.shape),
            full(p["conv1_w"].shape), full(p["conv1_b"].shape),
            full(p["conv2_w"].shape), full(p["conv2_b"].shape),
            full(p["pos_emb"].shape),
            per_layer(p["ln"].shape[1:]),
            per_layer(p["wqkv"].shape[1:]), per_layer(p["bqkv"].shape[1:]),
            per_layer(p["wo"].shape[1:]), per_layer(p["bo"].shape[1:]),
            per_layer(p["w1"].shape[1:]), per_layer(p["b1"].shape[1:]),
            per_layer(p["w2"].shape[1:]), per_layer(p["b2"].shape[1:]),
            full(p["lnf"].shape),
            full(p["convblk_w"].shape), full(p["convblk_b"].shape),
            full(p["mlp_w0"].shape), full(p["mlp_b0"].shape),
            full(p["mlp_w1"].shape), full(p["mlp_b1"].shape),
            full(p["mlp_w2"].shape), full(p["mlp_b2"].shape),
        ],
        out_specs=pl.BlockSpec((B, nout), lambda l: (0, 0)),
        scratch_shapes=[pltpu.VMEM((B * T, D), jnp.float32)],
        compiler_params=pltpu.CompilerParams(dimension_semantics=("arbitrary",)),
    )(pe, po, p["conv1_w"], p["conv1_b"], p["conv2_w"], p["conv2_b"], p["pos_emb"],
      p["ln"], p["wqkv"], p["bqkv"], p["wo"], p["bo"],
      p["w1"], p["b1"], p["w2"], p["b2"], p["lnf"],
      p["convblk_w"], p["convblk_b"],
      p["mlp_w0"], p["mlp_b0"], p["mlp_w1"], p["mlp_b1"],
      p["mlp_w2"], p["mlp_b2"])


# ------------------------------- params ------------------------------------

def init_params(key, cfg=CFG):
    n_mels, L = cfg["n_mels"], cfg["L"]
    D, H, FFN, NL = cfg["D"], cfg["heads"], cfg["ffn"], cfg["n_layers"]
    T = L // 2
    Dh = D // H
    keys = iter(jax.random.split(key, 64))
    bf16 = jnp.bfloat16

    def nrm(shape, s=0.05):
        return s * jax.random.normal(next(keys), shape, jnp.float32)

    p = {}
    # Whisper conv stem.  conv1 weight (n_mels*3, D) in im2col (c-major, k-minor)
    # order; conv2 weight tap-major (3, D, D) = (left, center, right).
    p["conv1_w"] = nrm((n_mels * 3, D)).astype(bf16)
    p["conv1_b"] = nrm((1, D))
    p["conv2_w"] = nrm((3, D, D)).astype(bf16)
    p["conv2_b"] = nrm((1, D))
    p["pos_emb"] = nrm((T, D))

    scale = Dh ** -0.5
    wq = nrm((NL, D, D)) * scale                      # q-scaling folded into weights
    bq = nrm((NL, 1, D)) * scale
    wk = nrm((NL, D, D))                              # k_proj has no bias in Whisper
    wv = nrm((NL, D, D))
    bv = nrm((NL, 1, D))
    p["wqkv"] = jnp.concatenate([wq, wk, wv], axis=-1).astype(bf16)       # (NL, D, 3D)
    p["bqkv"] = jnp.concatenate([bq, jnp.zeros((NL, 1, D), jnp.float32), bv], axis=-1)
    p["wo"] = nrm((NL, D, D)).astype(bf16)
    p["bo"] = nrm((NL, 1, D))
    ln1_g = 1.0 + nrm((NL, 1, D)); ln1_b = nrm((NL, 1, D))
    ln2_g = 1.0 + nrm((NL, 1, D)); ln2_b = nrm((NL, 1, D))
    p["ln"] = jnp.concatenate([ln1_g, ln1_b, ln2_g, ln2_b], axis=1)       # (NL, 4, D)
    p["w1"] = nrm((NL, D, FFN)).astype(bf16)
    p["b1"] = nrm((NL, 1, FFN))
    p["w2"] = nrm((NL, FFN, D)).astype(bf16)
    p["b2"] = nrm((NL, 1, D))
    p["lnf"] = jnp.concatenate([1.0 + nrm((1, D)), nrm((1, D))], axis=0)  # (2, D)

    # Conv block: Conv1d(1, C, 3, stride=1, bias=False) + BatchNorm1d folded (eval).
    C, k = cfg["conv_out"], cfg["conv_k"]
    wc = nrm((C, k))
    gamma = 1.0 + nrm((C,)); beta = nrm((C,))
    rmean = nrm((C,)); rvar = jnp.abs(nrm((C,))) + 1.0
    s = gamma / jnp.sqrt(rvar + 1e-5)
    p["convblk_w"] = wc * s[:, None]                  # (C, k)
    p["convblk_b"] = (beta - rmean * s)[:, None]      # (C, 1)

    # MLPBase head (mlp_input=C -> 16 -> 8 -> output_size).
    d0, d1 = cfg["mlp_dims"]
    p["mlp_w0"] = nrm((C, d0));  p["mlp_b0"] = nrm((1, d0))
    p["mlp_w1"] = nrm((d0, d1)); p["mlp_b1"] = nrm((1, d1))
    p["mlp_w2"] = nrm((d1, cfg["output_size"]))
    p["mlp_b2"] = nrm((1, cfg["output_size"]))
    return p


if __name__ == "__main__":
    key = jax.random.PRNGKey(0)
    k_params, k_x = jax.random.split(key)
    params = init_params(k_params)
    # x: (batch, n_mels, frames) mel-spectrogram input to the Whisper encoder.
    x = jax.random.normal(k_x, (CFG["B"], CFG["n_mels"], CFG["L"]), jnp.float32)
    fwd = jax.jit(functools.partial(cnn1d_net_whisper_forward, cfg=CFG))
    logits = jax.block_until_ready(fwd(params, x))
    assert logits.shape == (CFG["B"], CFG["output_size"])
    assert bool(jnp.all(jnp.isfinite(logits)))
    print("KERNEL_OK")
</pallas_src>

<mosaic_0001>
module attributes {stable_mosaic.version = 11 : i64} {
  func.func @_fused_kernel(%arg0: i32, %arg1: memref<16x24xf32, #tpu.memory_space<vmem>>, %arg2: memref<16x24xf32, #tpu.memory_space<vmem>>, %arg3: memref<24x32xbf16, #tpu.memory_space<vmem>>, %arg4: memref<1x32xf32, #tpu.memory_space<vmem>>, %arg5: memref<3x32x32xbf16, #tpu.memory_space<vmem>>, %arg6: memref<1x32xf32, #tpu.memory_space<vmem>>, %arg7: memref<8x32xf32, #tpu.memory_space<vmem>>, %arg8: memref<1x4x32xf32, #tpu.memory_space<vmem>>, %arg9: memref<1x32x96xbf16, #tpu.memory_space<vmem>>, %arg10: memref<1x1x96xf32, #tpu.memory_space<vmem>>, %arg11: memref<1x32x32xbf16, #tpu.memory_space<vmem>>, %arg12: memref<1x1x32xf32, #tpu.memory_space<vmem>>, %arg13: memref<1x32x64xbf16, #tpu.memory_space<vmem>>, %arg14: memref<1x1x64xf32, #tpu.memory_space<vmem>>, %arg15: memref<1x64x32xbf16, #tpu.memory_space<vmem>>, %arg16: memref<1x1x32xf32, #tpu.memory_space<vmem>>, %arg17: memref<2x32xf32, #tpu.memory_space<vmem>>, %arg18: memref<4x3xf32, #tpu.memory_space<vmem>>, %arg19: memref<4x1xf32, #tpu.memory_space<vmem>>, %arg20: memref<4x16xf32, #tpu.memory_space<vmem>>, %arg21: memref<1x16xf32, #tpu.memory_space<vmem>>, %arg22: memref<16x8xf32, #tpu.memory_space<vmem>>, %arg23: memref<1x8xf32, #tpu.memory_space<vmem>>, %arg24: memref<8x3xf32, #tpu.memory_space<vmem>>, %arg25: memref<1x3xf32, #tpu.memory_space<vmem>>, %arg26: memref<2x3xf32, #tpu.memory_space<vmem>>, %arg27: memref<16x32xf32, #tpu.memory_space<vmem>>) attributes {dimension_semantics = [#tpu.dimension_semantics<arbitrary>], iteration_bounds = array<i64: 2>, scalar_prefetch = 0 : i64, scratch_operands = 1 : i64, tpu.core_type = #tpu.core_type<tc>, window_params = [{pipeline_mode = #tpu.pipeline_mode<synchronous>, transform_indices = @transform_0, window_bounds = array<i64: 16, 24>}, {pipeline_mode = #tpu.pipeline_mode<synchronous>, transform_indices = @transform_1, window_bounds = array<i64: 16, 24>}, {pipeline_mode = #tpu.pipeline_mode<synchronous>, transform_indices = @transform_2, window_bounds = array<i64: 24, 32>}, {pipeline_mode = #tpu.pipeline_mode<synchronous>, transform_indices = @transform_3, window_bounds = array<i64: 1, 32>}, {pipeline_mode = #tpu.pipeline_mode<synchronous>, transform_indices = @transform_4, window_bounds = array<i64: 3, 32, 32>}, {pipeline_mode = #tpu.pipeline_mode<synchronous>, transform_indices = @transform_5, window_bounds = array<i64: 1, 32>}, {pipeline_mode = #tpu.pipeline_mode<synchronous>, transform_indices = @transform_6, window_bounds = array<i64: 8, 32>}, {transform_indices = @transform_7, window_bounds = array<i64: 1, 4, 32>}, {transform_indices = @transform_8, window_bounds = array<i64: 1, 32, 96>}, {transform_indices = @transform_9, window_bounds = array<i64: 1, 1, 96>}, {transform_indices = @transform_10, window_bounds = array<i64: 1, 32, 32>}, {transform_indices = @transform_11, window_bounds = array<i64: 1, 1, 32>}, {transform_indices = @transform_12, window_bounds = array<i64: 1, 32, 64>}, {transform_indices = @transform_13, window_bounds = array<i64: 1, 1, 64>}, {transform_indices = @transform_14, window_bounds = array<i64: 1, 64, 32>}, {transform_indices = @transform_15, window_bounds = array<i64: 1, 1, 32>}, {pipeline_mode = #tpu.pipeline_mode<synchronous>, transform_indices = @transform_16, window_bounds = array<i64: 2, 32>}, {pipeline_mode = #tpu.pipeline_mode<synchronous>, transform_indices = @transform_17, window_bounds = array<i64: 4, 3>}, {pipeline_mode = #tpu.pipeline_mode<synchronous>, transform_indices = @transform_18, window_bounds = array<i64: 4, 1>}, {pipeline_mode = #tpu.pipeline_mode<synchronous>, transform_indices = @transform_19, window_bounds = array<i64: 4, 16>}, {pipeline_mode = #tpu.pipeline_mode<synchronous>, transform_indices = @transform_20, window_bounds = array<i64: 1, 16>}, {pipeline_mode = #tpu.pipeline_mode<synchronous>, transform_indices = @transform_21, window_bounds = array<i64: 16, 8>}, {pipeline_mode = #tpu.pipeline_mode<synchronous>, transform_indices = @transform_22, window_bounds = array<i64: 1, 8>}, {pipeline_mode = #tpu.pipeline_mode<synchronous>, transform_indices = @transform_23, window_bounds = array<i64: 8, 3>}, {pipeline_mode = #tpu.pipeline_mode<synchronous>, transform_indices = @transform_24, window_bounds = array<i64: 1, 3>}, {pipeline_mode = #tpu.pipeline_mode<synchronous>, transform_indices = @transform_25, window_bounds = array<i64: 2, 3>}]} {
    %c0_i32 = arith.constant 0 : i32
    %0 = arith.cmpi eq, %arg0, %c0_i32 : i32
    %1 = arith.extui %0 : i1 to i32
    %c0_i32_0 = arith.constant 0 : i32
    %2 = arith.cmpi ne, %1, %c0_i32_0 : i32
    scf.if %2 {
      %c0_59 = arith.constant 0 : index
      %c0_60 = arith.constant 0 : index
      %154 = vector.load %arg1[%c0_59, %c0_60] : memref<16x24xf32, #tpu.memory_space<vmem>>, vector<16x24xf32>
      %c0_61 = arith.constant 0 : index
      %c0_62 = arith.constant 0 : index
      %155 = vector.load %arg3[%c0_61, %c0_62] : memref<24x32xbf16, #tpu.memory_space<vmem>>, vector<24x32xbf16>
      %156 = arith.truncf %154 : vector<16x24xf32> to vector<16x24xbf16>
      %cst_63 = arith.constant dense<0.000000e+00> : vector<16x32xf32>
      %157 = tpu.matmul %156, %155, %cst_63 {dimension_numbers = #tpu.dot_dimension_numbers<[1], [0], [0], [1], [0, 0, 1, 1], [], []>} : vector<16x24xbf16>, vector<24x32xbf16>, vector<16x32xf32> -> vector<16x32xf32>
      %c0_64 = arith.constant 0 : index
      %c0_65 = arith.constant 0 : index
      %158 = vector.load %arg4[%c0_64, %c0_65] : memref<1x32xf32, #tpu.memory_space<vmem>>, vector<1x32xf32>
      %159 = vector.broadcast %158 : vector<1x32xf32> to vector<16x32xf32>
      %160 = arith.addf %157, %159 : vector<16x32xf32>
      %161 = arith.mulf %160, %160 : vector<16x32xf32>
      %162 = arith.mulf %160, %161 : vector<16x32xf32>
      %cst_66 = arith.constant 4.471500e-02 : f32
      %163 = vector.broadcast %cst_66 : f32 to vector<16x32xf32>
      %164 = arith.mulf %163, %162 : vector<16x32xf32>
      %165 = arith.addf %160, %164 : vector<16x32xf32>
      %cst_67 = arith.constant 0.797884583 : f32
      %166 = vector.broadcast %cst_67 : f32 to vector<16x32xf32>
      %167 = arith.mulf %166, %165 : vector<16x32xf32>
      %168 = math.tanh %167 : vector<16x32xf32>
      %cst_68 = arith.constant 1.000000e+00 : f32
      %169 = vector.broadcast %cst_68 : f32 to vector<16x32xf32>
      %170 = arith.addf %169, %168 : vector<16x32xf32>
      %cst_69 = arith.constant 5.000000e-01 : f32
      %171 = vector.broadcast %cst_69 : f32 to vector<16x32xf32>
      %172 = arith.mulf %171, %170 : vector<16x32xf32>
      %173 = arith.mulf %160, %172 : vector<16x32xf32>
      %c0_70 = arith.constant 0 : index
      %c0_71 = arith.constant 0 : index
      %174 = vector.load %arg2[%c0_70, %c0_71] : memref<16x24xf32, #tpu.memory_space<vmem>>, vector<16x24xf32>
      %c0_72 = arith.constant 0 : index
      %c0_73 = arith.constant 0 : index
      %175 = vector.load %arg3[%c0_72, %c0_73] : memref<24x32xbf16, #tpu.memory_space<vmem>>, vector<24x32xbf16>
      %176 = arith.truncf %174 : vector<16x24xf32> to vector<16x24xbf16>
      %cst_74 = arith.constant dense<0.000000e+00> : vector<16x32xf32>
      %177 = tpu.matmul %176, %175, %cst_74 {dimension_numbers = #tpu.dot_dimension_numbers<[1], [0], [0], [1], [0, 0, 1, 1], [], []>} : vector<16x24xbf16>, vector<24x32xbf16>, vector<16x32xf32> -> vector<16x32xf32>
      %c0_75 = arith.constant 0 : index
      %c0_76 = arith.constant 0 : index
      %178 = vector.load %arg4[%c0_75, %c0_76] : memref<1x32xf32, #tpu.memory_space<vmem>>, vector<1x32xf32>
      %179 = vector.broadcast %178 : vector<1x32xf32> to vector<16x32xf32>
      %180 = arith.addf %177, %179 : vector<16x32xf32>
      %181 = arith.mulf %180, %180 : vector<16x32xf32>
      %182 = arith.mulf %180, %181 : vector<16x32xf32>
      %cst_77 = arith.constant 4.471500e-02 : f32
      %183 = vector.broadcast %cst_77 : f32 to vector<16x32xf32>
      %184 = arith.mulf %183, %182 : vector<16x32xf32>
      %185 = arith.addf %180, %184 : vector<16x32xf32>
      %cst_78 = arith.constant 0.797884583 : f32
      %186 = vector.broadcast %cst_78 : f32 to vector<16x32xf32>
      %187 = arith.mulf %186, %185 : vector<16x32xf32>
      %188 = math.tanh %187 : vector<16x32xf32>
      %cst_79 = arith.constant 1.000000e+00 : f32
      %189 = vector.broadcast %cst_79 : f32 to vector<16x32xf32>
      %190 = arith.addf %189, %188 : vector<16x32xf32>
      %cst_80 = arith.constant 5.000000e-01 : f32
      %191 = vector.broadcast %cst_80 : f32 to vector<16x32xf32>
      %192 = arith.mulf %191, %190 : vector<16x32xf32>
      %193 = arith.mulf %180, %192 : vector<16x32xf32>
      %194 = tpu.iota {dimensions = array<i32: 0>} : vector<16x1xi32>
      %c8_i32 = arith.constant 8 : i32
      %c0_i32_81 = arith.constant 0 : i32
      %195 = arith.cmpi eq, %c8_i32, %c0_i32_81 : i32
      %c1_i32_82 = arith.constant 1 : i32
      %196 = arith.select %195, %c1_i32_82, %c8_i32 : i32
      %197 = vector.broadcast %196 : i32 to vector<16x1xi32>
      %198 = arith.remsi %194, %197 : vector<16x1xi32>
      %c0_i32_83 = arith.constant 0 : i32
      %199 = vector.broadcast %c0_i32_83 : i32 to vector<16x1xi32>
      %200 = arith.cmpi ne, %198, %199 : vector<16x1xi32>
      %c0_i32_84 = arith.constant 0 : i32
      %201 = vector.broadcast %c0_i32_84 : i32 to vector<16x1xi32>
      %202 = arith.cmpi slt, %198, %201 : vector<16x1xi32>
      %c0_i32_85 = arith.constant 0 : i32
      %203 = arith.cmpi slt, %196, %c0_i32_85 : i32
      %204 = vector.broadcast %203 : i1 to vector<16x1xi1>
      %205 = vector.broadcast %204 : vector<16x1xi1> to vector<16x1xi1>
      %206 = arith.xori %202, %205 : vector<16x1xi1>
      %207 = arith.andi %206, %200 : vector<16x1xi1>
      %208 = vector.broadcast %196 : i32 to vector<16x1xi32>
      %209 = arith.addi %198, %208 : vector<16x1xi32>
      %210 = arith.select %207, %209, %198 : vector<16x1xi1>, vector<16x1xi32>
      %c0_i32_86 = arith.constant 0 : i32
      %211 = vector.broadcast %c0_i32_86 : i32 to vector<16x1xi32>
      %212 = arith.cmpi eq, %210, %211 : vector<16x1xi32>
      %c1_i32_87 = arith.constant 1 : i32
      %213 = tpu.dynamic_rotate %193 by %c1_i32_87 dim 0 : vector<16x32xf32>, i32 -> vector<16x32xf32>
      %cst_88 = arith.constant 0.000000e+00 : f32
      %214 = vector.shape_cast %212 : vector<16x1xi1> to vector<16x1xi1>
      %215 = vector.broadcast %214 : vector<16x1xi1> to vector<16x32xi1>
      %216 = vector.broadcast %cst_88 : f32 to vector<16x32xf32>
      %217 = arith.select %215, %216, %213 : vector<16x32xi1>, vector<16x32xf32>
      %c0_89 = arith.constant 0 : index
      %c0_90 = arith.constant 0 : index
      %c0_91 = arith.constant 0 : index
      %218 = vector.load %arg5[%c0_89, %c0_90, %c0_91] : memref<3x32x32xbf16, #tpu.memory_space<vmem>>, vector<1x32x32xbf16>
      %219 = vector.shape_cast %218 : vector<1x32x32xbf16> to vector<32x32xbf16>
      %220 = arith.truncf %217 : vector<16x32xf32> to vector<16x32xbf16>
      %cst_92 = arith.constant dense<0.000000e+00> : vector<16x32xf32>
      %221 = tpu.matmul %220, %219, %cst_92 {dimension_numbers = #tpu.dot_dimension_numbers<[1], [0], [0], [1], [0, 0, 1, 1], [], []>} : vector<16x32xbf16>, vector<32x32xbf16>, vector<16x32xf32> -> vector<16x32xf32>
      %c1 = arith.constant 1 : index
      %c0_93 = arith.constant 0 : index
      %c0_94 = arith.constant 0 : index
      %222 = vector.load %arg5[%c1, %c0_93, %c0_94] : memref<3x32x32xbf16, #tpu.memory_space<vmem>>, vector<1x32x32xbf16>
      %223 = vector.shape_cast %222 : vector<1x32x32xbf16> to vector<32x32xbf16>
      %224 = arith.truncf %173 : vector<16x32xf32> to vector<16x32xbf16>
      %cst_95 = arith.constant dense<0.000000e+00> : vector<16x32xf32>
      %225 = tpu.matmul %224, %223, %cst_95 {dimension_numbers = #tpu.dot_dimension_numbers<[1], [0], [0], [1], [0, 0, 1, 1], [], []>} : vector<16x32xbf16>, vector<32x32xbf16>, vector<16x32xf32> -> vector<16x32xf32>
      %226 = arith.addf %221, %225 : vector<16x32xf32>
      %c2 = arith.constant 2 : index
      %c0_96 = arith.constant 0 : index
      %c0_97 = arith.constant 0 : index
      %227 = vector.load %arg5[%c2, %c0_96, %c0_97] : memref<3x32x32xbf16, #tpu.memory_space<vmem>>, vector<1x32x32xbf16>
      %228 = vector.shape_cast %227 : vector<1x32x32xbf16> to vector<32x32xbf16>
      %229 = arith.truncf %193 : vector<16x32xf32> to vector<16x32xbf16>
      %cst_98 = arith.constant dense<0.000000e+00> : vector<16x32xf32>
      %230 = tpu.matmul %229, %228, %cst_98 {dimension_numbers = #tpu.dot_dimension_numbers<[1], [0], [0], [1], [0, 0, 1, 1], [], []>} : vector<16x32xbf16>, vector<32x32xbf16>, vector<16x32xf32> -> vector<16x32xf32>
      %231 = arith.addf %226, %230 : vector<16x32xf32>
      %c0_99 = arith.constant 0 : index
      %c0_100 = arith.constant 0 : index
      %232 = vector.load %arg6[%c0_99, %c0_100] : memref<1x32xf32, #tpu.memory_space<vmem>>, vector<1x32xf32>
      %233 = vector.broadcast %232 : vector<1x32xf32> to vector<16x32xf32>
      %234 = arith.addf %231, %233 : vector<16x32xf32>
      %235 = arith.mulf %234, %234 : vector<16x32xf32>
      %236 = arith.mulf %234, %235 : vector<16x32xf32>
      %cst_101 = arith.constant 4.471500e-02 : f32
      %237 = vector.broadcast %cst_101 : f32 to vector<16x32xf32>
      %238 = arith.mulf %237, %236 : vector<16x32xf32>
      %239 = arith.addf %234, %238 : vector<16x32xf32>
      %cst_102 = arith.constant 0.797884583 : f32
      %240 = vector.broadcast %cst_102 : f32 to vector<16x32xf32>
      %241 = arith.mulf %240, %239 : vector<16x32xf32>
      %242 = math.tanh %241 : vector<16x32xf32>
      %cst_103 = arith.constant 1.000000e+00 : f32
      %243 = vector.broadcast %cst_103 : f32 to vector<16x32xf32>
      %244 = arith.addf %243, %242 : vector<16x32xf32>
      %cst_104 = arith.constant 5.000000e-01 : f32
      %245 = vector.broadcast %cst_104 : f32 to vector<16x32xf32>
      %246 = arith.mulf %245, %244 : vector<16x32xf32>
      %247 = arith.mulf %234, %246 : vector<16x32xf32>
      %248 = vector.shape_cast %247 : vector<16x32xf32> to vector<2x8x32xf32>
      %c0_105 = arith.constant 0 : index
      %c0_106 = arith.constant 0 : index
      %249 = vector.load %arg7[%c0_105, %c0_106] : memref<8x32xf32, #tpu.memory_space<vmem>>, vector<8x32xf32>
      %250 = vector.shape_cast %249 : vector<8x32xf32> to vector<1x8x32xf32>
      %251 = vector.broadcast %250 : vector<1x8x32xf32> to vector<2x8x32xf32>
      %252 = arith.addf %248, %251 : vector<2x8x32xf32>
      %253 = vector.shape_cast %252 : vector<2x8x32xf32> to vector<16x32xf32>
      %c0_107 = arith.constant 0 : index
      %c0_108 = arith.constant 0 : index
      %254 = vector.load %arg27[%c0_107, %c0_108] : memref<16x32xf32, #tpu.memory_space<vmem>>, vector<16x32xf32>
      tpu.vector_store %arg27[%c0_107, %c0_108], %253 {strides = array<i32>} : memref<16x32xf32, #tpu.memory_space<vmem>>, vector<16x32xf32>,
    } else {
    }
    %c0 = arith.constant 0 : index
    %c0_1 = arith.constant 0 : index
    %c0_2 = arith.constant 0 : index
    %3 = vector.load %arg8[%c0, %c0_1, %c0_2] : memref<1x4x32xf32, #tpu.memory_space<vmem>>, vector<1x4x32xf32>
    %4 = vector.shape_cast %3 : vector<1x4x32xf32> to vector<4x32xf32>
    %c0_3 = arith.constant 0 : index
    %c0_4 = arith.constant 0 : index
    %5 = vector.load %arg27[%c0_3, %c0_4] : memref<16x32xf32, #tpu.memory_space<vmem>>, vector<16x32xf32>
    %6 = vector.extract_strided_slice %4 {offsets = [0, 0], sizes = [1, 32], strides = [1, 1]} : vector<4x32xf32> to vector<1x32xf32>
    %7 = vector.extract_strided_slice %4 {offsets = [1, 0], sizes = [1, 32], strides = [1, 1]} : vector<4x32xf32> to vector<1x32xf32>
    %cst = arith.constant dense<0.000000e+00> : vector<16xf32>
    %8 = vector.multi_reduction <add>, %5, %cst [1] : vector<16x32xf32> to vector<16xf32>
    %9 = vector.shape_cast %8 : vector<16xf32> to vector<16x1xf32>
    %cst_5 = arith.constant 3.200000e+01 : f32
    %10 = vector.broadcast %cst_5 : f32 to vector<16x1xf32>
    %11 = arith.divf %9, %10 : vector<16x1xf32>
    %12 = vector.broadcast %11 : vector<16x1xf32> to vector<16x32xf32>
    %13 = arith.subf %5, %12 : vector<16x32xf32>
    %14 = arith.mulf %13, %13 : vector<16x32xf32>
    %cst_6 = arith.constant dense<0.000000e+00> : vector<16xf32>
    %15 = vector.multi_reduction <add>, %14, %cst_6 [1] : vector<16x32xf32> to vector<16xf32>
    %16 = vector.shape_cast %15 : vector<16xf32> to vector<16x1xf32>
    %cst_7 = arith.constant 3.200000e+01 : f32
    %17 = vector.broadcast %cst_7 : f32 to vector<16x1xf32>
    %18 = arith.divf %16, %17 : vector<16x1xf32>
    %cst_8 = arith.constant 9.99999974E-6 : f32
    %19 = vector.broadcast %cst_8 : f32 to vector<16x1xf32>
    %20 = arith.addf %18, %19 : vector<16x1xf32>
    %21 = math.rsqrt %20 : vector<16x1xf32>
    %22 = vector.broadcast %21 : vector<16x1xf32> to vector<16x32xf32>
    %23 = arith.mulf %13, %22 : vector<16x32xf32>
    %24 = vector.broadcast %6 : vector<1x32xf32> to vector<16x32xf32>
    %25 = arith.mulf %23, %24 : vector<16x32xf32>
    %26 = vector.broadcast %7 : vector<1x32xf32> to vector<16x32xf32>
    %27 = arith.addf %25, %26 : vector<16x32xf32>
    %c0_9 = arith.constant 0 : index
    %c0_10 = arith.constant 0 : index
    %c0_11 = arith.constant 0 : index
    %28 = vector.load %arg9[%c0_9, %c0_10, %c0_11] : memref<1x32x96xbf16, #tpu.memory_space<vmem>>, vector<1x32x96xbf16>
    %29 = vector.shape_cast %28 : vector<1x32x96xbf16> to vector<32x96xbf16>
    %30 = arith.truncf %27 : vector<16x32xf32> to vector<16x32xbf16>
    %cst_12 = arith.constant dense<0.000000e+00> : vector<16x96xf32>
    %31 = tpu.matmul %30, %29, %cst_12 {dimension_numbers = #tpu.dot_dimension_numbers<[1], [0], [0], [1], [0, 0, 1, 1], [], []>} : vector<16x32xbf16>, vector<32x96xbf16>, vector<16x96xf32> -> vector<16x96xf32>
    %c0_13 = arith.constant 0 : index
    %c0_14 = arith.constant 0 : index
    %c0_15 = arith.constant 0 : index
    %32 = vector.load %arg10[%c0_13, %c0_14, %c0_15] : memref<1x1x96xf32, #tpu.memory_space<vmem>>, vector<1x1x96xf32>
    %33 = vector.shape_cast %32 : vector<1x1x96xf32> to vector<1x96xf32>
    %34 = vector.broadcast %33 : vector<1x96xf32> to vector<16x96xf32>
    %35 = arith.addf %31, %34 : vector<16x96xf32>
    %c0_16 = arith.constant 0 : index
    %c0_17 = arith.constant 0 : index
    %c0_18 = arith.constant 0 : index
    %36 = vector.load %arg11[%c0_16, %c0_17, %c0_18] : memref<1x32x32xbf16, #tpu.memory_space<vmem>>, vector<1x32x32xbf16>
    %37 = vector.shape_cast %36 : vector<1x32x32xbf16> to vector<32x32xbf16>
    %cst_19 = arith.constant 0.000000e+00 : f32
    %38 = vector.broadcast %cst_19 : f32 to vector<16x32xf32>
    %39 = vector.extract_strided_slice %35 {offsets = [0, 0], sizes = [16, 16], strides = [1, 1]} : vector<16x96xf32> to vector<16x16xf32>
    %40 = vector.shape_cast %39 : vector<16x16xf32> to vector<2x8x16xf32>
    %41 = vector.extract_strided_slice %35 {offsets = [0, 32], sizes = [16, 16], strides = [1, 1]} : vector<16x96xf32> to vector<16x16xf32>
    %42 = vector.shape_cast %41 : vector<16x16xf32> to vector<2x8x16xf32>
    %43 = vector.extract_strided_slice %35 {offsets = [0, 64], sizes = [16, 16], strides = [1, 1]} : vector<16x96xf32> to vector<16x16xf32>
    %44 = vector.shape_cast %43 : vector<16x16xf32> to vector<2x8x16xf32>
    %45 = arith.truncf %40 : vector<2x8x16xf32> to vector<2x8x16xbf16>
    %46 = arith.truncf %42 : vector<2x8x16xf32> to vector<2x8x16xbf16>
    %cst_20 = arith.constant dense<0.000000e+00> : vector<2x8x8xf32>
    %47 = tpu.matmul %45, %46, %cst_20 {dimension_numbers = #tpu.dot_dimension_numbers<[2], [2], [1], [1], [0, 0, 0, 1, 1, 1], [0], [0]>} : vector<2x8x16xbf16>, vector<2x8x16xbf16>, vector<2x8x8xf32> -> vector<2x8x8xf32>
    %cst_21 = arith.constant dense<0xFF800000> : vector<2x8xf32>
    %48 = vector.multi_reduction <maximumf>, %47, %cst_21 [2] : vector<2x8x8xf32> to vector<2x8xf32>
    %49 = vector.shape_cast %48 : vector<2x8xf32> to vector<2x8x1xf32>
    %50 = vector.broadcast %49 : vector<2x8x1xf32> to vector<2x8x8xf32>
    %51 = arith.subf %47, %50 : vector<2x8x8xf32>
    %52 = math.exp %51 : vector<2x8x8xf32>
    %cst_22 = arith.constant dense<0.000000e+00> : vector<2x8xf32>
    %53 = vector.multi_reduction <add>, %52, %cst_22 [2] : vector<2x8x8xf32> to vector<2x8xf32>
    %54 = vector.shape_cast %53 : vector<2x8xf32> to vector<2x8x1xf32>
    %55 = tpu.reciprocal %54 {approx = true} : vector<2x8x1xf32> -> vector<2x8x1xf32>
    %56 = vector.broadcast %55 : vector<2x8x1xf32> to vector<2x8x8xf32>
    %57 = arith.mulf %52, %56 : vector<2x8x8xf32>
    %58 = arith.truncf %57 : vector<2x8x8xf32> to vector<2x8x8xbf16>
    %59 = arith.truncf %44 : vector<2x8x16xf32> to vector<2x8x16xbf16>
    %cst_23 = arith.constant dense<0.000000e+00> : vector<2x8x16xf32>
    %60 = tpu.matmul %58, %59, %cst_23 {dimension_numbers = #tpu.dot_dimension_numbers<[2], [1], [1], [2], [0, 0, 0, 1, 1, 2], [0], [0]>} : vector<2x8x8xbf16>, vector<2x8x16xbf16>, vector<2x8x16xf32> -> vector<2x8x16xf32>
    %61 = vector.shape_cast %60 : vector<2x8x16xf32> to vector<16x16xf32>
    %62 = vector.extract_strided_slice %37 {offsets = [0, 0], sizes = [16, 32], strides = [1, 1]} : vector<32x32xbf16> to vector<16x32xbf16>
    %63 = arith.truncf %61 : vector<16x16xf32> to vector<16x16xbf16>
    %cst_24 = arith.constant dense<0.000000e+00> : vector<16x32xf32>
    %64 = tpu.matmul %63, %62, %cst_24 {dimension_numbers = #tpu.dot_dimension_numbers<[1], [0], [0], [1], [0, 0, 1, 1], [], []>} : vector<16x16xbf16>, vector<16x32xbf16>, vector<16x32xf32> -> vector<16x32xf32>
    %65 = arith.addf %38, %64 : vector<16x32xf32>
    %66 = vector.extract_strided_slice %35 {offsets = [0, 16], sizes = [16, 16], strides = [1, 1]} : vector<16x96xf32> to vector<16x16xf32>
    %67 = vector.shape_cast %66 : vector<16x16xf32> to vector<2x8x16xf32>
    %68 = vector.extract_strided_slice %35 {offsets = [0, 48], sizes = [16, 16], strides = [1, 1]} : vector<16x96xf32> to vector<16x16xf32>
    %69 = vector.shape_cast %68 : vector<16x16xf32> to vector<2x8x16xf32>
    %70 = vector.extract_strided_slice %35 {offsets = [0, 80], sizes = [16, 16], strides = [1, 1]} : vector<16x96xf32> to vector<16x16xf32>
    %71 = vector.shape_cast %70 : vector<16x16xf32> to vector<2x8x16xf32>
    %72 = arith.truncf %67 : vector<2x8x16xf32> to vector<2x8x16xbf16>
    %73 = arith.truncf %69 : vector<2x8x16xf32> to vector<2x8x16xbf16>
    %cst_25 = arith.constant dense<0.000000e+00> : vector<2x8x8xf32>
    %74 = tpu.matmul %72, %73, %cst_25 {dimension_numbers = #tpu.dot_dimension_numbers<[2], [2], [1], [1], [0, 0, 0, 1, 1, 1], [0], [0]>} : vector<2x8x16xbf16>, vector<2x8x16xbf16>, vector<2x8x8xf32> -> vector<2x8x8xf32>
    %cst_26 = arith.constant dense<0xFF800000> : vector<2x8xf32>
    %75 = vector.multi_reduction <maximumf>, %74, %cst_26 [2] : vector<2x8x8xf32> to vector<2x8xf32>
    %76 = vector.shape_cast %75 : vector<2x8xf32> to vector<2x8x1xf32>
    %77 = vector.broadcast %76 : vector<2x8x1xf32> to vector<2x8x8xf32>
    %78 = arith.subf %74, %77 : vector<2x8x8xf32>
    %79 = math.exp %78 : vector<2x8x8xf32>
    %cst_27 = arith.constant dense<0.000000e+00> : vector<2x8xf32>
    %80 = vector.multi_reduction <add>, %79, %cst_27 [2] : vector<2x8x8xf32> to vector<2x8xf32>
    %81 = vector.shape_cast %80 : vector<2x8xf32> to vector<2x8x1xf32>
    %82 = tpu.reciprocal %81 {approx = true} : vector<2x8x1xf32> -> vector<2x8x1xf32>
    %83 = vector.broadcast %82 : vector<2x8x1xf32> to vector<2x8x8xf32>
    %84 = arith.mulf %79, %83 : vector<2x8x8xf32>
    %85 = arith.truncf %84 : vector<2x8x8xf32> to vector<2x8x8xbf16>
    %86 = arith.truncf %71 : vector<2x8x16xf32> to vector<2x8x16xbf16>
    %cst_28 = arith.constant dense<0.000000e+00> : vector<2x8x16xf32>
    %87 = tpu.matmul %85, %86, %cst_28 {dimension_numbers = #tpu.dot_dimension_numbers<[2], [1], [1], [2], [0, 0, 0, 1, 1, 2], [0], [0]>} : vector<2x8x8xbf16>, vector<2x8x16xbf16>, vector<2x8x16xf32> -> vector<2x8x16xf32>
    %88 = vector.shape_cast %87 : vector<2x8x16xf32> to vector<16x16xf32>
    %89 = vector.extract_strided_slice %37 {offsets = [16, 0], sizes = [16, 32], strides = [1, 1]} : vector<32x32xbf16> to vector<16x32xbf16>
    %90 = arith.truncf %88 : vector<16x16xf32> to vector<16x16xbf16>
    %cst_29 = arith.constant dense<0.000000e+00> : vector<16x32xf32>
    %91 = tpu.matmul %90, %89, %cst_29 {dimension_numbers = #tpu.dot_dimension_numbers<[1], [0], [0], [1], [0, 0, 1, 1], [], []>} : vector<16x16xbf16>, vector<16x32xbf16>, vector<16x32xf32> -> vector<16x32xf32>
    %92 = arith.addf %65, %91 : vector<16x32xf32>
    %93 = arith.addf %5, %92 : vector<16x32xf32>
    %c0_30 = arith.constant 0 : index
    %c0_31 = arith.constant 0 : index
    %c0_32 = arith.constant 0 : index
    %94 = vector.load %arg12[%c0_30, %c0_31, %c0_32] : memref<1x1x32xf32, #tpu.memory_space<vmem>>, vector<1x1x32xf32>
    %95 = vector.shape_cast %94 : vector<1x1x32xf32> to vector<1x32xf32>
    %96 = vector.broadcast %95 : vector<1x32xf32> to vector<16x32xf32>
    %97 = arith.addf %93, %96 : vector<16x32xf32>
    %98 = vector.extract_strided_slice %4 {offsets = [2, 0], sizes = [1, 32], strides = [1, 1]} : vector<4x32xf32> to vector<1x32xf32>
    %99 = vector.extract_strided_slice %4 {offsets = [3, 0], sizes = [1, 32], strides = [1, 1]} : vector<4x32xf32> to vector<1x32xf32>
    %cst_33 = arith.constant dense<0.000000e+00> : vector<16xf32>
    %100 = vector.multi_reduction <add>, %97, %cst_33 [1] : vector<16x32xf32> to vector<16xf32>
    %101 = vector.shape_cast %100 : vector<16xf32> to vector<16x1xf32>
    %cst_34 = arith.constant 3.200000e+01 : f32
    %102 = vector.broadcast %cst_34 : f32 to vector<16x1xf32>
    %103 = arith.divf %101, %102 : vector<16x1xf32>
    %104 = vector.broadcast %103 : vector<16x1xf32> to vector<16x32xf32>
    %105 = arith.subf %97, %104 : vector<16x32xf32>
    %106 = arith.mulf %105, %105 : vector<16x32xf32>
    %cst_35 = arith.constant dense<0.000000e+00> : vector<16xf32>
    %107 = vector.multi_reduction <add>, %106, %cst_35 [1] : vector<16x32xf32> to vector<16xf32>
    %108 = vector.shape_cast %107 : vector<16xf32> to vector<16x1xf32>
    %cst_36 = arith.constant 3.200000e+01 : f32
    %109 = vector.broadcast %cst_36 : f32 to vector<16x1xf32>
    %110 = arith.divf %108, %109 : vector<16x1xf32>
    %cst_37 = arith.constant 9.99999974E-6 : f32
    %111 = vector.broadcast %cst_37 : f32 to vector<16x1xf32>
    %112 = arith.addf %110, %111 : vector<16x1xf32>
    %113 = math.rsqrt %112 : vector<16x1xf32>
    %114 = vector.broadcast %113 : vector<16x1xf32> to vector<16x32xf32>
    %115 = arith.mulf %105, %114 : vector<16x32xf32>
    %116 = vector.broadcast %98 : vector<1x32xf32> to vector<16x32xf32>
    %117 = arith.mulf %115, %116 : vector<16x32xf32>
    %118 = vector.broadcast %99 : vector<1x32xf32> to vector<16x32xf32>
    %119 = arith.addf %117, %118 : vector<16x32xf32>
    %c0_38 = arith.constant 0 : index
    %c0_39 = arith.constant 0 : index
    %c0_40 = arith.constant 0 : index
    %120 = vector.load %arg13[%c0_38, %c0_39, %c0_40] : memref<1x32x64xbf16, #tpu.memory_space<vmem>>, vector<1x32x64xbf16>
    %121 = vector.shape_cast %120 : vector<1x32x64xbf16> to vector<32x64xbf16>
    %122 = arith.truncf %119 : vector<16x32xf32> to vector<16x32xbf16>
    %cst_41 = arith.constant dense<0.000000e+00> : vector<16x64xf32>
    %123 = tpu.matmul %122, %121, %cst_41 {dimension_numbers = #tpu.dot_dimension_numbers<[1], [0], [0], [1], [0, 0, 1, 1], [], []>} : vector<16x32xbf16>, vector<32x64xbf16>, vector<16x64xf32> -> vector<16x64xf32>
    %c0_42 = arith.constant 0 : index
    %c0_43 = arith.constant 0 : index
    %c0_44 = arith.constant 0 : index
    %124 = vector.load %arg14[%c0_42, %c0_43, %c0_44] : memref<1x1x64xf32, #tpu.memory_space<vmem>>, vector<1x1x64xf32>
    %125 = vector.shape_cast %124 : vector<1x1x64xf32> to vector<1x64xf32>
    %126 = vector.broadcast %125 : vector<1x64xf32> to vector<16x64xf32>
    %127 = arith.addf %123, %126 : vector<16x64xf32>
    %128 = arith.mulf %127, %127 : vector<16x64xf32>
    %129 = arith.mulf %127, %128 : vector<16x64xf32>
    %cst_45 = arith.constant 4.471500e-02 : f32
    %130 = vector.broadcast %cst_45 : f32 to vector<16x64xf32>
    %131 = arith.mulf %130, %129 : vector<16x64xf32>
    %132 = arith.addf %127, %131 : vector<16x64xf32>
    %cst_46 = arith.constant 0.797884583 : f32
    %133 = vector.broadcast %cst_46 : f32 to vector<16x64xf32>
    %134 = arith.mulf %133, %132 : vector<16x64xf32>
    %135 = math.tanh %134 : vector<16x64xf32>
    %cst_47 = arith.constant 1.000000e+00 : f32
    %136 = vector.broadcast %cst_47 : f32 to vector<16x64xf32>
    %137 = arith.addf %136, %135 : vector<16x64xf32>
    %cst_48 = arith.constant 5.000000e-01 : f32
    %138 = vector.broadcast %cst_48 : f32 to vector<16x64xf32>
    %139 = arith.mulf %138, %137 : vector<16x64xf32>
    %140 = arith.mulf %127, %139 : vector<16x64xf32>
    %c0_49 = arith.constant 0 : index
    %c0_50 = arith.constant 0 : index
    %c0_51 = arith.constant 0 : index
    %141 = vector.load %arg15[%c0_49, %c0_50, %c0_51] : memref<1x64x32xbf16, #tpu.memory_space<vmem>>, vector<1x64x32xbf16>
    %142 = vector.shape_cast %141 : vector<1x64x32xbf16> to vector<64x32xbf16>
    %143 = arith.truncf %140 : vector<16x64xf32> to vector<16x64xbf16>
    %cst_52 = arith.constant dense<0.000000e+00> : vector<16x32xf32>
    %144 = tpu.matmul %143, %142, %cst_52 {dimension_numbers = #tpu.dot_dimension_numbers<[1], [0], [0], [1], [0, 0, 1, 1], [], []>} : vector<16x64xbf16>, vector<64x32xbf16>, vector<16x32xf32> -> vector<16x32xf32>
    %145 = arith.addf %97, %144 : vector<16x32xf32>
    %c0_53 = arith.constant 0 : index
    %c0_54 = arith.constant 0 : index
    %c0_55 = arith.constant 0 : index
    %146 = vector.load %arg16[%c0_53, %c0_54, %c0_55] : memref<1x1x32xf32, #tpu.memory_space<vmem>>, vector<1x1x32xf32>
    %147 = vector.shape_cast %146 : vector<1x1x32xf32> to vector<1x32xf32>
    %148 = vector.broadcast %147 : vector<1x32xf32> to vector<16x32xf32>
    %149 = arith.addf %145, %148 : vector<16x32xf32>
    %c0_56 = arith.constant 0 : index
    %c0_57 = arith.constant 0 : index
    %150 = vector.load %arg27[%c0_56, %c0_57] : memref<16x32xf32, #tpu.memory_space<vmem>>, vector<16x32xf32>
    tpu.vector_store %arg27[%c0_56, %c0_57], %149 {strides = array<i32>} : memref<16x32xf32, #tpu.memory_space<vmem>>, vector<16x32xf32>,
    %c1_i32 = arith.constant 1 : i32
    %151 = arith.cmpi eq, %arg0, %c1_i32 : i32
    %152 = arith.extui %151 : i1 to i32
    %c0_i32_58 = arith.constant 0 : i32
    %153 = arith.cmpi ne, %152, %c0_i32_58 : i32
    scf.if %153 {
      %c0_59 = arith.constant 0 : index
      %c0_60 = arith.constant 0 : index
      %154 = vector.load %arg17[%c0_59, %c0_60] : memref<2x32xf32, #tpu.memory_space<vmem>>, vector<2x32xf32>
      %155 = vector.extract_strided_slice %154 {offsets = [0, 0], sizes = [1, 32], strides = [1, 1]} : vector<2x32xf32> to vector<1x32xf32>
      %156 = vector.extract_strided_slice %154 {offsets = [1, 0], sizes = [1, 32], strides = [1, 1]} : vector<2x32xf32> to vector<1x32xf32>
      %cst_61 = arith.constant dense<0.000000e+00> : vector<16xf32>
      %157 = vector.multi_reduction <add>, %149, %cst_61 [1] : vector<16x32xf32> to vector<16xf32>
      %158 = vector.shape_cast %157 : vector<16xf32> to vector<16x1xf32>
      %cst_62 = arith.constant 3.200000e+01 : f32
      %159 = vector.broadcast %cst_62 : f32 to vector<16x1xf32>
      %160 = arith.divf %158, %159 : vector<16x1xf32>
      %161 = vector.broadcast %160 : vector<16x1xf32> to vector<16x32xf32>
      %162 = arith.subf %149, %161 : vector<16x32xf32>
      %163 = arith.mulf %162, %162 : vector<16x32xf32>
      %cst_63 = arith.constant dense<0.000000e+00> : vector<16xf32>
      %164 = vector.multi_reduction <add>, %163, %cst_63 [1] : vector<16x32xf32> to vector<16xf32>
      %165 = vector.shape_cast %164 : vector<16xf32> to vector<16x1xf32>
      %cst_64 = arith.constant 3.200000e+01 : f32
      %166 = vector.broadcast %cst_64 : f32 to vector<16x1xf32>
      %167 = arith.divf %165, %166 : vector<16x1xf32>
      %cst_65 = arith.constant 9.99999974E-6 : f32
      %168 = vector.broadcast %cst_65 : f32 to vector<16x1xf32>
      %169 = arith.addf %167, %168 : vector<16x1xf32>
      %170 = math.rsqrt %169 : vector<16x1xf32>
      %171 = vector.broadcast %170 : vector<16x1xf32> to vector<16x32xf32>
      %172 = arith.mulf %162, %171 : vector<16x32xf32>
      %173 = vector.broadcast %155 : vector<1x32xf32> to vector<16x32xf32>
      %174 = arith.mulf %172, %173 : vector<16x32xf32>
      %175 = vector.broadcast %156 : vector<1x32xf32> to vector<16x32xf32>
      %176 = arith.addf %174, %175 : vector<16x32xf32>
      %177 = vector.shape_cast %176 : vector<16x32xf32> to vector<2x8x32xf32>
      %cst_66 = arith.constant dense<0.000000e+00> : vector<2x32xf32>
      %178 = vector.multi_reduction <add>, %177, %cst_66 [1] : vector<2x8x32xf32> to vector<2x32xf32>
      %cst_67 = arith.constant 8.000000e+00 : f32
      %179 = vector.broadcast %cst_67 : f32 to vector<2x32xf32>
      %180 = arith.divf %178, %179 : vector<2x32xf32>
      %181 = tpu.iota {dimensions = array<i32: 1>} : vector<2x29xi32>
      %c2_i32 = arith.constant 2 : i32
      %c0_i32_68 = arith.constant 0 : i32
      %182 = arith.cmpi eq, %c2_i32, %c0_i32_68 : i32
      %c1_i32_69 = arith.constant 1 : i32
      %183 = arith.select %182, %c1_i32_69, %c2_i32 : i32
      %184 = vector.broadcast %183 : i32 to vector<2x29xi32>
      %185 = arith.remsi %181, %184 : vector<2x29xi32>
      %c0_i32_70 = arith.constant 0 : i32
      %186 = vector.broadcast %c0_i32_70 : i32 to vector<2x29xi32>
      %187 = arith.cmpi ne, %185, %186 : vector<2x29xi32>
      %c0_i32_71 = arith.constant 0 : i32
      %188 = vector.broadcast %c0_i32_71 : i32 to vector<2x29xi32>
      %189 = arith.cmpi slt, %185, %188 : vector<2x29xi32>
      %c0_i32_72 = arith.constant 0 : i32
      %190 = arith.cmpi slt, %183, %c0_i32_72 : i32
      %191 = vector.broadcast %190 : i1 to vector<2x29xi1>
      %192 = vector.broadcast %191 : vector<2x29xi1> to vector<2x29xi1>
      %193 = arith.xori %189, %192 : vector<2x29xi1>
      %194 = arith.andi %193, %187 : vector<2x29xi1>
      %195 = vector.broadcast %183 : i32 to vector<2x29xi32>
      %196 = arith.addi %185, %195 : vector<2x29xi32>
      %197 = arith.select %194, %196, %185 : vector<2x29xi1>, vector<2x29xi32>
      %c0_i32_73 = arith.constant 0 : i32
      %198 = vector.broadcast %c0_i32_73 : i32 to vector<2x29xi32>
      %199 = arith.cmpi eq, %197, %198 : vector<2x29xi32>
      %c30_i32 = arith.constant 30 : i32
      %200 = vector.broadcast %c30_i32 : i32 to vector<2x29xi32>
      %201 = arith.cmpi slt, %181, %200 : vector<2x29xi32>
      %202 = arith.andi %199, %201 : vector<2x29xi1>
      %c0_74 = arith.constant 0 : index
      %c0_75 = arith.constant 0 : index
      %203 = vector.load %arg19[%c0_74, %c0_75] : memref<4x1xf32, #tpu.memory_space<vmem>>, vector<1x1xf32>
      %204 = vector.extract_strided_slice %180 {offsets = [0, 0], sizes = [2, 30], strides = [1, 1]} : vector<2x32xf32> to vector<2x30xf32>
      %c0_76 = arith.constant 0 : index
      %c0_77 = arith.constant 0 : index
      %205 = vector.load %arg18[%c0_76, %c0_77] : memref<4x3xf32, #tpu.memory_space<vmem>>, vector<1x1xf32>
      %206 = vector.broadcast %205 : vector<1x1xf32> to vector<2x30xf32>
      %207 = arith.mulf %204, %206 : vector<2x30xf32>
      %208 = vector.broadcast %203 : vector<1x1xf32> to vector<2x30xf32>
      %209 = arith.addf %208, %207 : vector<2x30xf32>
      %210 = vector.extract_strided_slice %180 {offsets = [0, 1], sizes = [2, 30], strides = [1, 1]} : vector<2x32xf32> to vector<2x30xf32>
      %c0_78 = arith.constant 0 : index
      %c1 = arith.constant 1 : index
      %211 = vector.load %arg18[%c0_78, %c1] : memref<4x3xf32, #tpu.memory_space<vmem>>, vector<1x1xf32>
      %212 = vector.broadcast %211 : vector<1x1xf32> to vector<2x30xf32>
      %213 = arith.mulf %210, %212 : vector<2x30xf32>
      %214 = arith.addf %209, %213 : vector<2x30xf32>
      %215 = vector.extract_strided_slice %180 {offsets = [0, 2], sizes = [2, 30], strides = [1, 1]} : vector<2x32xf32> to vector<2x30xf32>
      %c0_79 = arith.constant 0 : index
      %c2 = arith.constant 2 : index
      %216 = vector.load %arg18[%c0_79, %c2] : memref<4x3xf32, #tpu.memory_space<vmem>>, vector<1x1xf32>
      %217 = vector.broadcast %216 : vector<1x1xf32> to vector<2x30xf32>
      %218 = arith.mulf %215, %217 : vector<2x30xf32>
      %219 = arith.addf %214, %218 : vector<2x30xf32>
      %cst_80 = arith.constant 0.000000e+00 : f32
      %220 = vector.broadcast %cst_80 : f32 to vector<2x30xf32>
      %221 = arith.maximumf %219, %220 : vector<2x30xf32>
      %222 = vector.extract_strided_slice %221 {offsets = [0, 0], sizes = [2, 29], strides = [1, 1]} : vector<2x30xf32> to vector<2x29xf32>
      %223 = vector.extract_strided_slice %221 {offsets = [0, 1], sizes = [2, 29], strides = [1, 1]} : vector<2x30xf32> to vector<2x29xf32>
      %224 = arith.maximumf %222, %223 : vector<2x29xf32>
      %cst_81 = arith.constant 0.000000e+00 : f32
      %225 = vector.broadcast %cst_81 : f32 to vector<2x29xf32>
      %226 = arith.select %202, %224, %225 : vector<2x29xi1>, vector<2x29xf32>
      %cst_82 = arith.constant dense<0.000000e+00> : vector<2xf32>
      %227 = vector.multi_reduction <add>, %226, %cst_82 [1] : vector<2x29xf32> to vector<2xf32>
      %228 = vector.shape_cast %227 : vector<2xf32> to vector<2x1xf32>
      %cst_83 = arith.constant 0.0666666701 : f32
      %229 = vector.broadcast %cst_83 : f32 to vector<2x1xf32>
      %230 = arith.mulf %228, %229 : vector<2x1xf32>
      %c1_84 = arith.constant 1 : index
      %c0_85 = arith.constant 0 : index
      %231 = vector.load %arg19[%c1_84, %c0_85] : memref<4x1xf32, #tpu.memory_space<vmem>>, vector<1x1xf32>
      %232 = vector.extract_strided_slice %180 {offsets = [0, 0], sizes = [2, 30], strides = [1, 1]} : vector<2x32xf32> to vector<2x30xf32>
      %c1_86 = arith.constant 1 : index
      %c0_87 = arith.constant 0 : index
      %233 = vector.load %arg18[%c1_86, %c0_87] : memref<4x3xf32, #tpu.memory_space<vmem>>, vector<1x1xf32>
      %234 = vector.broadcast %233 : vector<1x1xf32> to vector<2x30xf32>
      %235 = arith.mulf %232, %234 : vector<2x30xf32>
      %236 = vector.broadcast %231 : vector<1x1xf32> to vector<2x30xf32>
      %237 = arith.addf %236, %235 : vector<2x30xf32>
      %238 = vector.extract_strided_slice %180 {offsets = [0, 1], sizes = [2, 30], strides = [1, 1]} : vector<2x32xf32> to vector<2x30xf32>
      %c1_88 = arith.constant 1 : index
      %c1_89 = arith.constant 1 : index
      %239 = vector.load %arg18[%c1_88, %c1_89] : memref<4x3xf32, #tpu.memory_space<vmem>>, vector<1x1xf32>
      %240 = vector.broadcast %239 : vector<1x1xf32> to vector<2x30xf32>
      %241 = arith.mulf %238, %240 : vector<2x30xf32>
      %242 = arith.addf %237, %241 : vector<2x30xf32>
      %243 = vector.extract_strided_slice %180 {offsets = [0, 2], sizes = [2, 30], strides = [1, 1]} : vector<2x32xf32> to vector<2x30xf32>
      %c1_90 = arith.constant 1 : index
      %c2_91 = arith.constant 2 : index
      %244 = vector.load %arg18[%c1_90, %c2_91] : memref<4x3xf32, #tpu.memory_space<vmem>>, vector<1x1xf32>
      %245 = vector.broadcast %244 : vector<1x1xf32> to vector<2x30xf32>
      %246 = arith.mulf %243, %245 : vector<2x30xf32>
      %247 = arith.addf %242, %246 : vector<2x30xf32>
      %cst_92 = arith.constant 0.000000e+00 : f32
      %248 = vector.broadcast %cst_92 : f32 to vector<2x30xf32>
      %249 = arith.maximumf %247, %248 : vector<2x30xf32>
      %250 = vector.extract_strided_slice %249 {offsets = [0, 0], sizes = [2, 29], strides = [1, 1]} : vector<2x30xf32> to vector<2x29xf32>
      %251 = vector.extract_strided_slice %249 {offsets = [0, 1], sizes = [2, 29], strides = [1, 1]} : vector<2x30xf32> to vector<2x29xf32>
      %252 = arith.maximumf %250, %251 : vector<2x29xf32>
      %cst_93 = arith.constant 0.000000e+00 : f32
      %253 = vector.broadcast %cst_93 : f32 to vector<2x29xf32>
      %254 = arith.select %202, %252, %253 : vector<2x29xi1>, vector<2x29xf32>
      %cst_94 = arith.constant dense<0.000000e+00> : vector<2xf32>
      %255 = vector.multi_reduction <add>, %254, %cst_94 [1] : vector<2x29xf32> to vector<2xf32>
      %256 = vector.shape_cast %255 : vector<2xf32> to vector<2x1xf32>
      %cst_95 = arith.constant 0.0666666701 : f32
      %257 = vector.broadcast %cst_95 : f32 to vector<2x1xf32>
      %258 = arith.mulf %256, %257 : vector<2x1xf32>
      %c2_96 = arith.constant 2 : index
      %c0_97 = arith.constant 0 : index
      %259 = vector.load %arg19[%c2_96, %c0_97] : memref<4x1xf32, #tpu.memory_space<vmem>>, vector<1x1xf32>
      %260 = vector.extract_strided_slice %180 {offsets = [0, 0], sizes = [2, 30], strides = [1, 1]} : vector<2x32xf32> to vector<2x30xf32>
      %c2_98 = arith.constant 2 : index
      %c0_99 = arith.constant 0 : index
      %261 = vector.load %arg18[%c2_98, %c0_99] : memref<4x3xf32, #tpu.memory_space<vmem>>, vector<1x1xf32>
      %262 = vector.broadcast %261 : vector<1x1xf32> to vector<2x30xf32>
      %263 = arith.mulf %260, %262 : vector<2x30xf32>
      %264 = vector.broadcast %259 : vector<1x1xf32> to vector<2x30xf32>
      %265 = arith.addf %264, %263 : vector<2x30xf32>
      %266 = vector.extract_strided_slice %180 {offsets = [0, 1], sizes = [2, 30], strides = [1, 1]} : vector<2x32xf32> to vector<2x30xf32>
      %c2_100 = arith.constant 2 : index
      %c1_101 = arith.constant 1 : index
      %267 = vector.load %arg18[%c2_100, %c1_101] : memref<4x3xf32, #tpu.memory_space<vmem>>, vector<1x1xf32>
      %268 = vector.broadcast %267 : vector<1x1xf32> to vector<2x30xf32>
      %269 = arith.mulf %266, %268 : vector<2x30xf32>
      %270 = arith.addf %265, %269 : vector<2x30xf32>
      %271 = vector.extract_strided_slice %180 {offsets = [0, 2], sizes = [2, 30], strides = [1, 1]} : vector<2x32xf32> to vector<2x30xf32>
      %c2_102 = arith.constant 2 : index
      %c2_103 = arith.constant 2 : index
      %272 = vector.load %arg18[%c2_102, %c2_103] : memref<4x3xf32, #tpu.memory_space<vmem>>, vector<1x1xf32>
      %273 = vector.broadcast %272 : vector<1x1xf32> to vector<2x30xf32>
      %274 = arith.mulf %271, %273 : vector<2x30xf32>
      %275 = arith.addf %270, %274 : vector<2x30xf32>
      %cst_104 = arith.constant 0.000000e+00 : f32
      %276 = vector.broadcast %cst_104 : f32 to vector<2x30xf32>
      %277 = arith.maximumf %275, %276 : vector<2x30xf32>
      %278 = vector.extract_strided_slice %277 {offsets = [0, 0], sizes = [2, 29], strides = [1, 1]} : vector<2x30xf32> to vector<2x29xf32>
      %279 = vector.extract_strided_slice %277 {offsets = [0, 1], sizes = [2, 29], strides = [1, 1]} : vector<2x30xf32> to vector<2x29xf32>
      %280 = arith.maximumf %278, %279 : vector<2x29xf32>
      %cst_105 = arith.constant 0.000000e+00 : f32
      %281 = vector.broadcast %cst_105 : f32 to vector<2x29xf32>
      %282 = arith.select %202, %280, %281 : vector<2x29xi1>, vector<2x29xf32>
      %cst_106 = arith.constant dense<0.000000e+00> : vector<2xf32>
      %283 = vector.multi_reduction <add>, %282, %cst_106 [1] : vector<2x29xf32> to vector<2xf32>
      %284 = vector.shape_cast %283 : vector<2xf32> to vector<2x1xf32>
      %cst_107 = arith.constant 0.0666666701 : f32
      %285 = vector.broadcast %cst_107 : f32 to vector<2x1xf32>
      %286 = arith.mulf %284, %285 : vector<2x1xf32>
      %c3 = arith.constant 3 : index
      %c0_108 = arith.constant 0 : index
      %287 = vector.load %arg19[%c3, %c0_108] : memref<4x1xf32, #tpu.memory_space<vmem>>, vector<1x1xf32>
      %288 = vector.extract_strided_slice %180 {offsets = [0, 0], sizes = [2, 30], strides = [1, 1]} : vector<2x32xf32> to vector<2x30xf32>
      %c3_109 = arith.constant 3 : index
      %c0_110 = arith.constant 0 : index
      %289 = vector.load %arg18[%c3_109, %c0_110] : memref<4x3xf32, #tpu.memory_space<vmem>>, vector<1x1xf32>
      %290 = vector.broadcast %289 : vector<1x1xf32> to vector<2x30xf32>
      %291 = arith.mulf %288, %290 : vector<2x30xf32>
      %292 = vector.broadcast %287 : vector<1x1xf32> to vector<2x30xf32>
      %293 = arith.addf %292, %291 : vector<2x30xf32>
      %294 = vector.extract_strided_slice %180 {offsets = [0, 1], sizes = [2, 30], strides = [1, 1]} : vector<2x32xf32> to vector<2x30xf32>
      %c3_111 = arith.constant 3 : index
      %c1_112 = arith.constant 1 : index
      %295 = vector.load %arg18[%c3_111, %c1_112] : memref<4x3xf32, #tpu.memory_space<vmem>>, vector<1x1xf32>
      %296 = vector.broadcast %295 : vector<1x1xf32> to vector<2x30xf32>
      %297 = arith.mulf %294, %296 : vector<2x30xf32>
      %298 = arith.addf %293, %297 : vector<2x30xf32>
      %299 = vector.extract_strided_slice %180 {offsets = [0, 2], sizes = [2, 30], strides = [1, 1]} : vector<2x32xf32> to vector<2x30xf32>
      %c3_113 = arith.constant 3 : index
      %c2_114 = arith.constant 2 : index
      %300 = vector.load %arg18[%c3_113, %c2_114] : memref<4x3xf32, #tpu.memory_space<vmem>>, vector<1x1xf32>
      %301 = vector.broadcast %300 : vector<1x1xf32> to vector<2x30xf32>
      %302 = arith.mulf %299, %301 : vector<2x30xf32>
      %303 = arith.addf %298, %302 : vector<2x30xf32>
      %cst_115 = arith.constant 0.000000e+00 : f32
      %304 = vector.broadcast %cst_115 : f32 to vector<2x30xf32>
      %305 = arith.maximumf %303, %304 : vector<2x30xf32>
      %306 = vector.extract_strided_slice %305 {offsets = [0, 0], sizes = [2, 29], strides = [1, 1]} : vector<2x30xf32> to vector<2x29xf32>
      %307 = vector.extract_strided_slice %305 {offsets = [0, 1], sizes = [2, 29], strides = [1, 1]} : vector<2x30xf32> to vector<2x29xf32>
      %308 = arith.maximumf %306, %307 : vector<2x29xf32>
      %cst_116 = arith.constant 0.000000e+00 : f32
      %309 = vector.broadcast %cst_116 : f32 to vector<2x29xf32>
      %310 = arith.select %202, %308, %309 : vector<2x29xi1>, vector<2x29xf32>
      %cst_117 = arith.constant dense<0.000000e+00> : vector<2xf32>
      %311 = vector.multi_reduction <add>, %310, %cst_117 [1] : vector<2x29xf32> to vector<2xf32>
      %312 = vector.shape_cast %311 : vector<2xf32> to vector<2x1xf32>
      %cst_118 = arith.constant 0.0666666701 : f32
      %313 = vector.broadcast %cst_118 : f32 to vector<2x1xf32>
      %314 = arith.mulf %312, %313 : vector<2x1xf32>
      %315 = tpu.concatenate %230, %258, %286, %314 in 1 : vector<2x1xf32>, vector<2x1xf32>, vector<2x1xf32>, vector<2x1xf32> -> vector<2x4xf32>
      %c0_119 = arith.constant 0 : index
      %c0_120 = arith.constant 0 : index
      %316 = vector.load %arg20[%c0_119, %c0_120] : memref<4x16xf32, #tpu.memory_space<vmem>>, vector<4x16xf32>
      %317 = arith.truncf %315 : vector<2x4xf32> to vector<2x4xbf16>
      %318 = arith.truncf %316 : vector<4x16xf32> to vector<4x16xbf16>
      %cst_121 = arith.constant dense<0.000000e+00> : vector<2x16xf32>
      %319 = tpu.matmul %317, %318, %cst_121 {dimension_numbers = #tpu.dot_dimension_numbers<[1], [0], [0], [1], [0, 0, 1, 1], [], []>} : vector<2x4xbf16>, vector<4x16xbf16>, vector<2x16xf32> -> vector<2x16xf32>
      %c0_122 = arith.constant 0 : index
      %c0_123 = arith.constant 0 : index
      %320 = vector.load %arg21[%c0_122, %c0_123] : memref<1x16xf32, #tpu.memory_space<vmem>>, vector<1x16xf32>
      %321 = vector.broadcast %320 : vector<1x16xf32> to vector<2x16xf32>
      %322 = arith.addf %319, %321 : vector<2x16xf32>
      %cst_124 = arith.constant 0.000000e+00 : f32
      %323 = vector.broadcast %cst_124 : f32 to vector<2x16xf32>
      %324 = arith.maximumf %322, %323 : vector<2x16xf32>
      %c0_125 = arith.constant 0 : index
      %c0_126 = arith.constant 0 : index
      %325 = vector.load %arg22[%c0_125, %c0_126] : memref<16x8xf32, #tpu.memory_space<vmem>>, vector<16x8xf32>
      %326 = arith.truncf %324 : vector<2x16xf32> to vector<2x16xbf16>
      %327 = arith.truncf %325 : vector<16x8xf32> to vector<16x8xbf16>
      %cst_127 = arith.constant dense<0.000000e+00> : vector<2x8xf32>
      %328 = tpu.matmul %326, %327, %cst_127 {dimension_numbers = #tpu.dot_dimension_numbers<[1], [0], [0], [1], [0, 0, 1, 1], [], []>} : vector<2x16xbf16>, vector<16x8xbf16>, vector<2x8xf32> -> vector<2x8xf32>
      %c0_128 = arith.constant 0 : index
      %c0_129 = arith.constant 0 : index
      %329 = vector.load %arg23[%c0_128, %c0_129] : memref<1x8xf32, #tpu.memory_space<vmem>>, vector<1x8xf32>
      %330 = vector.broadcast %329 : vector<1x8xf32> to vector<2x8xf32>
      %331 = arith.addf %328, %330 : vector<2x8xf32>
      %cst_130 = arith.constant 0.000000e+00 : f32
      %332 = vector.broadcast %cst_130 : f32 to vector<2x8xf32>
      %333 = arith.maximumf %331, %332 : vector<2x8xf32>
      %c0_131 = arith.constant 0 : index
      %c0_132 = arith.constant 0 : index
      %334 = vector.load %arg24[%c0_131, %c0_132] : memref<8x3xf32, #tpu.memory_space<vmem>>, vector<8x3xf32>
      %335 = arith.truncf %333 : vector<2x8xf32> to vector<2x8xbf16>
      %336 = arith.truncf %334 : vector<8x3xf32> to vector<8x3xbf16>
      %cst_133 = arith.constant dense<0.000000e+00> : vector<2x3xf32>
      %337 = tpu.matmul %335, %336, %cst_133 {dimension_numbers = #tpu.dot_dimension_numbers<[1], [0], [0], [1], [0, 0, 1, 1], [], []>} : vector<2x8xbf16>, vector<8x3xbf16>, vector<2x3xf32> -> vector<2x3xf32>
      %c0_134 = arith.constant 0 : index
      %c0_135 = arith.constant 0 : index
      %338 = vector.load %arg25[%c0_134, %c0_135] : memref<1x3xf32, #tpu.memory_space<vmem>>, vector<1x3xf32>
      %339 = vector.broadcast %338 : vector<1x3xf32> to vector<2x3xf32>
      %340 = arith.addf %337, %339 : vector<2x3xf32>
      %c0_136 = arith.constant 0 : index
      %c0_137 = arith.constant 0 : index
      %341 = vector.load %arg26[%c0_136, %c0_137] : memref<2x3xf32, #tpu.memory_space<vmem>>, vector<2x3xf32>
      tpu.vector_store %arg26[%c0_136, %c0_137], %340 {strides = array<i32>} : memref<2x3xf32, #tpu.memory_space<vmem>>, vector<2x3xf32>,
    } else {
    }
    return
  }
  func.func @transform_0(%arg0: i32) -> (i32, i32) {
    %c0_i32 = arith.constant 0 : i32
    %c0_i32_0 = arith.constant 0 : i32
    %c0_i32_1 = arith.constant 0 : i32
    return %c0_i32, %c0_i32_0 : i32, i32
  }
  func.func @transform_1(%arg0: i32) -> (i32, i32) {
    %c0_i32 = arith.constant 0 : i32
    %c0_i32_0 = arith.constant 0 : i32
    %c0_i32_1 = arith.constant 0 : i32
    return %c0_i32, %c0_i32_0 : i32, i32
  }
  func.func @transform_2(%arg0: i32) -> (i32, i32) {
    %c0_i32 = arith.constant 0 : i32
    %c0_i32_0 = arith.constant 0 : i32
    %c0_i32_1 = arith.constant 0 : i32
    return %c0_i32, %c0_i32_0 : i32, i32
  }
  func.func @transform_3(%arg0: i32) -> (i32, i32) {
    %c0_i32 = arith.constant 0 : i32
    %c0_i32_0 = arith.constant 0 : i32
    %c0_i32_1 = arith.constant 0 : i32
    return %c0_i32, %c0_i32_0 : i32, i32
  }
  func.func @transform_4(%arg0: i32) -> (i32, i32, i32) {
    %c0_i32 = arith.constant 0 : i32
    %c0_i32_0 = arith.constant 0 : i32
    %c0_i32_1 = arith.constant 0 : i32
    %c0_i32_2 = arith.constant 0 : i32
    return %c0_i32, %c0_i32_0, %c0_i32_1 : i32, i32, i32
  }
  func.func @transform_5(%arg0: i32) -> (i32, i32) {
    %c0_i32 = arith.constant 0 : i32
    %c0_i32_0 = arith.constant 0 : i32
    %c0_i32_1 = arith.constant 0 : i32
    return %c0_i32, %c0_i32_0 : i32, i32
  }
  func.func @transform_6(%arg0: i32) -> (i32, i32) {
    %c0_i32 = arith.constant 0 : i32
    %c0_i32_0 = arith.constant 0 : i32
    %c0_i32_1 = arith.constant 0 : i32
    return %c0_i32, %c0_i32_0 : i32, i32
  }
  func.func @transform_7(%arg0: i32) -> (i32, i32, i32) {
    %c0_i32 = arith.constant 0 : i32
    %c0_i32_0 = arith.constant 0 : i32
    %c0_i32_1 = arith.constant 0 : i32
    return %arg0, %c0_i32, %c0_i32_0 : i32, i32, i32
  }
  func.func @transform_8(%arg0: i32) -> (i32, i32, i32) {
    %c0_i32 = arith.constant 0 : i32
    %c0_i32_0 = arith.constant 0 : i32
    %c0_i32_1 = arith.constant 0 : i32
    return %arg0, %c0_i32, %c0_i32_0 : i32, i32, i32
  }
  func.func @transform_9(%arg0: i32) -> (i32, i32, i32) {
    %c0_i32 = arith.constant 0 : i32
    %c0_i32_0 = arith.constant 0 : i32
    %c0_i32_1 = arith.constant 0 : i32
    return %arg0, %c0_i32, %c0_i32_0 : i32, i32, i32
  }
  func.func @transform_10(%arg0: i32) -> (i32, i32, i32) {
    %c0_i32 = arith.constant 0 : i32
    %c0_i32_0 = arith.constant 0 : i32
    %c0_i32_1 = arith.constant 0 : i32
    return %arg0, %c0_i32, %c0_i32_0 : i32, i32, i32
  }
  func.func @transform_11(%arg0: i32) -> (i32, i32, i32) {
    %c0_i32 = arith.constant 0 : i32
    %c0_i32_0 = arith.constant 0 : i32
    %c0_i32_1 = arith.constant 0 : i32
    return %arg0, %c0_i32, %c0_i32_0 : i32, i32, i32
  }
  func.func @transform_12(%arg0: i32) -> (i32, i32, i32) {
    %c0_i32 = arith.constant 0 : i32
    %c0_i32_0 = arith.constant 0 : i32
    %c0_i32_1 = arith.constant 0 : i32
    return %arg0, %c0_i32, %c0_i32_0 : i32, i32, i32
  }
  func.func @transform_13(%arg0: i32) -> (i32, i32, i32) {
    %c0_i32 = arith.constant 0 : i32
    %c0_i32_0 = arith.constant 0 : i32
    %c0_i32_1 = arith.constant 0 : i32
    return %arg0, %c0_i32, %c0_i32_0 : i32, i32, i32
  }
  func.func @transform_14(%arg0: i32) -> (i32, i32, i32) {
    %c0_i32 = arith.constant 0 : i32
    %c0_i32_0 = arith.constant 0 : i32
    %c0_i32_1 = arith.constant 0 : i32
    return %arg0, %c0_i32, %c0_i32_0 : i32, i32, i32
  }
  func.func @transform_15(%arg0: i32) -> (i32, i32, i32) {
    %c0_i32 = arith.constant 0 : i32
    %c0_i32_0 = arith.constant 0 : i32
    %c0_i32_1 = arith.constant 0 : i32
    return %arg0, %c0_i32, %c0_i32_0 : i32, i32, i32
  }
  func.func @transform_16(%arg0: i32) -> (i32, i32) {
    %c0_i32 = arith.constant 0 : i32
    %c0_i32_0 = arith.constant 0 : i32
    %c0_i32_1 = arith.constant 0 : i32
    return %c0_i32, %c0_i32_0 : i32, i32
  }
  func.func @transform_17(%arg0: i32) -> (i32, i32) {
    %c0_i32 = arith.constant 0 : i32
    %c0_i32_0 = arith.constant 0 : i32
    %c0_i32_1 = arith.constant 0 : i32
    return %c0_i32, %c0_i32_0 : i32, i32
  }
  func.func @transform_18(%arg0: i32) -> (i32, i32) {
    %c0_i32 = arith.constant 0 : i32
    %c0_i32_0 = arith.constant 0 : i32
    %c0_i32_1 = arith.constant 0 : i32
    return %c0_i32, %c0_i32_0 : i32, i32
  }
  func.func @transform_19(%arg0: i32) -> (i32, i32) {
    %c0_i32 = arith.constant 0 : i32
    %c0_i32_0 = arith.constant 0 : i32
    %c0_i32_1 = arith.constant 0 : i32
    return %c0_i32, %c0_i32_0 : i32, i32
  }
  func.func @transform_20(%arg0: i32) -> (i32, i32) {
    %c0_i32 = arith.constant 0 : i32
    %c0_i32_0 = arith.constant 0 : i32
    %c0_i32_1 = arith.constant 0 : i32
    return %c0_i32, %c0_i32_0 : i32, i32
  }
  func.func @transform_21(%arg0: i32) -> (i32, i32) {
    %c0_i32 = arith.constant 0 : i32
    %c0_i32_0 = arith.constant 0 : i32
    %c0_i32_1 = arith.constant 0 : i32
    return %c0_i32, %c0_i32_0 : i32, i32
  }
  func.func @transform_22(%arg0: i32) -> (i32, i32) {
    %c0_i32 = arith.constant 0 : i32
    %c0_i32_0 = arith.constant 0 : i32
    %c0_i32_1 = arith.constant 0 : i32
    return %c0_i32, %c0_i32_0 : i32, i32
  }
  func.func @transform_23(%arg0: i32) -> (i32, i32) {
    %c0_i32 = arith.constant 0 : i32
    %c0_i32_0 = arith.constant 0 : i32
    %c0_i32_1 = arith.constant 0 : i32
    return %c0_i32, %c0_i32_0 : i32, i32
  }
  func.func @transform_24(%arg0: i32) -> (i32, i32) {
    %c0_i32 = arith.constant 0 : i32
    %c0_i32_0 = arith.constant 0 : i32
    %c0_i32_1 = arith.constant 0 : i32
    return %c0_i32, %c0_i32_0 : i32, i32
  }
  func.func @transform_25(%arg0: i32) -> (i32, i32) {
    %c0_i32 = arith.constant 0 : i32
    %c0_i32_0 = arith.constant 0 : i32
    %c0_i32_1 = arith.constant 0 : i32
    return %c0_i32, %c0_i32_0 : i32, i32
  }
}

</mosaic_0001>

<bundles_post_ra>
// kernel: cnn1d_net_whisper_forward.1
= control target key start
LH: loop header
LB: loop body
LE: loop exit
PB: predicated region body
PF: predicated region fallthrough
CT: control target
= control target key end

     0   :  { %s3930_s0 = inlined_call_operand.vmem [shape: f32[16,24], index: 0, kind: input, shape index: {}]   ;;  %s3931_s1 = inlined_call_operand.vmem [shape: f32[16,24], index: 1, kind: input, shape index: {}]   ;;  %s3932_s2 = inlined_call_operand.vmem [shape: bf16[24,32], index: 2, kind: input, shape index: {}]   ;;  %s3933_s3 = inlined_call_operand.vmem [shape: f32[1,32], index: 3, kind: input, shape index: {}]   ;;  %s3934_s4 = inlined_call_operand.vmem [shape: bf16[3,32,32], index: 4, kind: input, shape index: {}]   ;;  %s3935_s5 = inlined_call_operand.vmem [shape: f32[1,32], index: 5, kind: input, shape index: {}]   ;;  %s3936_s6 = inlined_call_operand.vmem [shape: f32[8,32], index: 6, kind: input, shape index: {}]   ;;  %s3937_s7 = inlined_call_operand.vmem [shape: f32[2,4,32], index: 7, kind: input, shape index: {}]   ;;  %s3938_s8 = inlined_call_operand.vmem [shape: bf16[2,32,96], index: 8, kind: input, shape index: {}]   ;;  %s3939_s9 = inlined_call_operand.vmem [shape: f32[2,1,96], index: 9, kind: input, shape index: {}]   ;;  %s3940_s10 = inlined_call_operand.vmem [shape: bf16[2,32,32], index: 10, kind: input, shape index: {}]   ;;  %s3941_s11 = inlined_call_operand.vmem [shape: f32[2,1,32], index: 11, kind: input, shape index: {}]   ;;  %s3942_s12 = inlined_call_operand.vmem [shape: bf16[2,32,64], index: 12, kind: input, shape index: {}]   ;;  %s3943_s13 = inlined_call_operand.vmem [shape: f32[2,1,64], index: 13, kind: input, shape index: {}]   ;;  %s3944_s14 = inlined_call_operand.vmem [shape: bf16[2,64,32], index: 14, kind: input, shape index: {}]   ;;  %s3945_s15 = inlined_call_operand.vmem [shape: f32[2,1,32], index: 15, kind: input, shape index: {}]   ;;  %s3946_s16 = inlined_call_operand.vmem [shape: f32[2,32], index: 16, kind: input, shape index: {}]   ;;  %s3947_s17 = inlined_call_operand.vmem [shape: f32[4,3], index: 17, kind: input, shape index: {}]   ;;  %s3948_s18 = inlined_call_operand.vmem [shape: f32[4,1], index: 18, kind: input, shape index: {}]   ;;  %s3949_s19 = inlined_call_operand.vmem [shape: f32[4,16], index: 19, kind: input, shape index: {}]   ;;  %s3950_s20 = inlined_call_operand.vmem [shape: f32[1,16], index: 20, kind: input, shape index: {}]   ;;  %s3951_s21 = inlined_call_operand.vmem [shape: f32[16,8], index: 21, kind: input, shape index: {}]   ;;  %s3952_s22 = inlined_call_operand.vmem [shape: f32[1,8], index: 22, kind: input, shape index: {}]   ;;  %s3953_s23 = inlined_call_operand.vmem [shape: f32[8,3], index: 23, kind: input, shape index: {}]   ;;  %s3954_s24 = inlined_call_operand.vmem [shape: f32[1,3], index: 24, kind: input, shape index: {}]   ;;  %s3955_s25 = inlined_call_operand.hbm [shape: f32[2,3], index: 25, kind: output, shape index: {}]  }
   0x1   :  { %3963 = sst [smem:[#allocation7_spill]] %s3930_s0 }
   0x2   :  { %3964 = sst [smem:[#allocation8_spill]] %s3931_s1 }
   0x3   :  { %3965 = sst [smem:[#allocation9_spill]] %s3932_s2 }
   0x4   :  { %3966 = sst [smem:[#allocation10_spill]] %s3933_s3 }
   0x5   :  { %3967 = sst [smem:[#allocation11_spill]] %s3934_s4 }
   0x6   :  { %3968 = sst [smem:[#allocation12_spill]] %s3935_s5 }
   0x7   :  { %3969 = sst [smem:[#allocation13_spill]] %s3936_s6 }
   0x8   :  { %3970 = sst [smem:[#allocation14_spill]] %s3937_s7 }
   0x9   :  { %3971 = sst [smem:[#allocation15_spill]] %s3938_s8 }
   0xa   :  { %3972 = sst [smem:[#allocation16_spill]] %s3939_s9 }
   0xb   :  { %3973 = sst [smem:[#allocation17_spill]] %s3950_s20 }
   0xc   :  { %3974 = sst [smem:[#allocation18_spill]] %s3951_s21 }
   0xd   :  { %3975 = sst [smem:[#allocation19_spill]] %s3952_s22 }
   0xe   :  { %3976 = sst [smem:[#allocation20_spill]] %s3953_s23 }
   0xf   :  { %3977 = sst [smem:[#allocation21_spill]] %s3954_s24 }
  0x10   :  { %3978 = sst [smem:[#allocation22_spill]] %s3955_s25 }
  0x11   :  { %30 = vsyncpa [#allocation4], 0  ;;  %s3437_s29 = smov 0  }
  0x12 LB: > { %3979 = sst [smem:[#allocation6_spill]] %s3291_s29  ;;  %s3443_s2 = sadd.s32 4294967295, %s3291_s29   ;;  %s3291_s29 = sphi %s3437_s29, %s36_s29  }
  0x13   : > { %p2859_p0 = scmp.ge.s32.totalorder %s3291_s29, 1  ;;  %p754_p1 = scmp.lt.s32.totalorder %s3291_s29, 3 }
  0x15   : > { %p755_p2 = pnand %p2859_p0, %p754_p1 }
  0x16   : > { %p848_p3 = scmp.lt.s32.totalorder (!%p755_p2), %s3443_s2, 1  ;;  %s3980_s1 = sld [smem:[#allocation14_spill]] (!%p755_p2) }
  0x17   : > { %758 = sbr.rel (%p755_p2) target bundleno = 4928 (0x1340), region = 120  ;;  %s3981_s28 = sld [smem:[#allocation15_spill]] (!%p755_p2) }
  0x18   : > { %p2869_p4 = scmp.ne.s32.totalorder (!%p755_p2), %s3443_s2, 0 }
  0x1e   : > { %s3449_s6 = scalar_select %p848_p3, %s3443_s2, 1 }
  0x1f   : > { %888 = sbr.rel (%p2869_p4) target bundleno = 551 (0x227), region = 124  ;;  %v3293_v1 = vmov (!%p2869_p4), 0.0   ;;  %vm915_vm0 = vcmask (!%p2869_p4), 1043456   ;;  %vm911_vm1 = vcmask (!%p2869_p4), 195584   ;;  %vm3294_vm2 = vmmov (!%p2869_p4), 0   ;;  %s3986_s29 = sld [smem:[#allocation11_spill]] (!%p2869_p4) }
  0x20   : > { %s2860_s30 = sshll.u32 %s3449_s6, 2  ;;  %s2931_s7 = sshll.u32 %s3449_s6, 4  ;;  %2987 = vmatprep.subr.bf16.mxu0 (!%p2869_p4), %v3293_v1  ;;  %2995 = vmatprep.subr.bf16.mxu1 (!%p2869_p4), %v3293_v1  ;;  %v1043_v47 = vlaneseq (!%p2869_p4)  ;;  %vm1106_vm3 = vcmask (!%p2869_p4), 261120  }
  0x21   : > { %s3456_s8 = scalar_lea.vmem %s3980_s1, %s2860_s30  ;;  %s3461_s9 = scalar_lea.vmem %s3981_s28, %s2931_s7  ;;  %2991 = vmatprep.mubr.msk.bf16.mxu0 (!%p2869_p4), %vm3294_vm2, %v3293_v1  ;;  %2999 = vmatprep.mubr.msk.bf16.mxu1 (!%p2869_p4), %vm3294_vm2, %v3293_v1 }
  0x22   : > { %s3470_s20 = scalar_lea.vmem %s3940_s10, %s2931_s7  ;;  %s867_s3 = scalar_lea.vmem %s3941_s11, %s3449_s6  ;;  %v1044_v48 = vshrl.u32 (!%p2869_p4), %v1043_v47, 7 }
  0x23   : > { %s3479_s1 = scalar_lea.vmem %s3942_s12, %s2931_s7  ;;  %s2934_s5 = sshll.u32 %s3449_s6, 5 }
  0x24   : > { %s3489_s22 = scalar_lea.vmem %s3944_s14, %s2934_s5  ;;  %s3983_s30 = sld [smem:[#allocation9_spill]] (!%p2869_p4)  ;;  %v1045_v54 = vadd.s32 (!%p2869_p4), 8, %v1044_v48  ;;  %v1050_v61 = vand.u32 (!%p2869_p4), 7, %v1044_v48  ;;  %vm1074_vm5 = vcmp.lt.s32.totalorder (!%p2869_p4), %v1044_v48, 1 }
  0x25   : > { %s3984_s5 = sld [smem:[#allocation7_spill]] (!%p2869_p4)  ;;  %s3985_s7 = sld [smem:[#allocation8_spill]] (!%p2869_p4)  ;;  %v3195_v10 = vld [vmem:[%s3986_s29 + $0x10] sm:$0xff] (!%p2869_p4)  }
  0x26   : > { %s3987_s0 = smov %s3986_s29  ;;  %s3988_s28 = sld [smem:[#allocation10_spill]]  ;;  %vm1070_vm4 = vcmp.eq.s32.totalorder %v1050_v61, 0 }
  0x27   : > { %v3196_v11 = vld [vmem:[%s3987_s0 + $0x18] sm:$0xff]   ;;  %v3197_v12 = vld [vmem:[%s3987_s0] sm:$0xff]   ;;  %v3199_v13 = vld [vmem:[%s3987_s0 + $0x8] sm:$0xff]   ;;  %s3989_s25 = sld [smem:[#allocation12_spill]] }
  0x2a   : > { %v3193_v0 = vld [vmem:[%s3983_s30] sm:$0xff]   ;;  %v3194_v2 = vld [vmem:[%s3983_s30 + $0x8] ss:$0 sps:$4 sm:$0xff]  }
  0x2b   : > { %2988 = vmatpush3.bf16.msra.mxu0 %v3193_v0  ;;  %2996 = vmatpush3.bf16.msra.mxu1 %v3193_v0  ;;  %v889_v3 = vld [vmem:[%s3984_s5] sm:$0xff]  ;;  %v890_v4 = vld [vmem:[%s3984_s5 + $0x8] sm:$0xff]  ;;  %v917_v6 = vsel %vm915_vm0, %v3194_v2, 0  ;;  %v1057_v0 = vand.u32 7, %v1045_v54 }
  0x2c   : > { %v978_v5 = vld [vmem:[%s3985_s7] sm:$0xff]  ;;  %2989 = vmatprep.subr.bf16.mxu0 %v3293_v1  ;;  %2997 = vmatprep.subr.bf16.mxu1 %v3293_v1  ;;  %v979_v7 = vld [vmem:[%s3985_s7 + $0x8] sm:$0xff]  ;;  %v894_v8 = vpack.c.bf16 %v890_v4, %v889_v3 }
  0x2d   : > { %v980_v9 = vpack.c.bf16 %v979_v7, %v978_v5  ;;  %v2870_v14 = vld [vmem:[%s3988_s28] ss:$0 sm:$0xff]  ;;  %vm1071_vm6 = vcmp.eq.s32.totalorder %v1057_v0, 0  ;;  %s3990_s28 = sld [smem:[#allocation13_spill]] }
  0x2e   : > { %v3198_v5 = vld [vmem:[%s3987_s0 + $0x20] sm:$0xff]  }
  0x2f   : > { %2990 = vmatpush3.bf16.msra.mxu0 %v917_v6  ;;  %2998 = vmatpush3.bf16.msra.mxu1 %v917_v6 }
  0x30   : > { %3003 = vmatprep.subr.bf16.mxu0 %v3293_v1  ;;  %3011 = vmatprep.subr.bf16.mxu1 %v3293_v1 }
  0x32   : > { %2992 = vmatmul.mubr.msk.bf16.vlgmr.msra.gmra.mrb[0].mxu0 %vm911_vm1, %v894_v8  ;;  %3000 = vmatmul.mubr.msk.bf16.vlgmr.msra.gmra.mrb[0].mxu1 %vm911_vm1, %v980_v9 }
  0x33   : > { %3007 = vmatprep.mubr.msk.bf16.mxu0 %vm3294_vm2, %v3293_v1  ;;  %3015 = vmatprep.mubr.msk.bf16.mxu1 %vm3294_vm2, %v3293_v1 }
  0x34   : > { %3004 = vmatpush3.bf16.msra.mxu0 %v3195_v10  ;;  %3012 = vmatpush3.bf16.msra.mxu1 %v3197_v12  ;;  %v3200_v12 = vld [vmem:[%s3987_s0 + $0x28] sm:$0xff]  }
  0x35   : > { %3005 = vmatprep.subr.bf16.mxu0 %v3293_v1  ;;  %3013 = vmatprep.subr.bf16.mxu1 %v3293_v1 }
  0x38   : > { %3006 = vmatpush3.bf16.msra.mxu0 %v3196_v11  ;;  %3014 = vmatpush3.bf16.msra.mxu1 %v3199_v13 }
  0x39   : > { %3019 = vmatprep.subr.bf16.mxu0 %v3293_v1 }
 0x105   : > { %v953_v15 = vpop.f32.mrb[0].mxu0  ;;  %v1018_v16 = vpop.f32.mrb[0].mxu1 }
 0x106   : > { %v954_v17 = vadd.f32 %v2870_v14, %v953_v15  ;;  %v1019_v18 = vadd.f32 %v2870_v14, %v1018_v16  ;;  %v2993_v19 = vpop.f32.mrb[1].mxu0  ;;  %v3001_v20 = vpop.f32.mrb[1].mxu1 }
 0x107   : > { %v956_v21 = vpop.f32.mrb[2].mxu0  ;;  %v1021_v22 = vpop.f32.mrb[2].mxu1 }
 0x108   : > { %v960_v23 = vmul.f32 %v954_v17, %v954_v17  ;;  %v1025_v24 = vmul.f32 %v1019_v18, %v1019_v18  ;;  %v957_v25 = vadd.f32 %v2870_v14, %v956_v21  ;;  %v1022_v26 = vadd.f32 %v2870_v14, %v1021_v22  ;;  %v2994_v27 = vpop.f32.mrb[3].mxu0  ;;  %v3002_v28 = vpop.f32.mrb[3].mxu1 }
 0x10a   : > { %v962_v29 = vmul.f32 %v960_v23, %v954_v17  ;;  %v1027_v30 = vmul.f32 %v1025_v24, %v1019_v18  ;;  %v961_v31 = vmul.f32 %v957_v25, %v957_v25  ;;  %v1026_v32 = vmul.f32 %v1022_v26, %v1022_v26 }
 0x10c   : > { %v964_v33 = vmul.f32 0.044715, %v962_v29  ;;  %v1029_v34 = vmul.f32 0.044715, %v1027_v30  ;;  %v963_v35 = vmul.f32 %v961_v31, %v957_v25  ;;  %v1028_v36 = vmul.f32 %v1026_v32, %v1022_v26 }
 0x10e   : > { %v966_v37 = vadd.f32 %v964_v33, %v954_v17  ;;  %v1031_v38 = vadd.f32 %v1029_v34, %v1019_v18  ;;  %v965_v39 = vmul.f32 0.044715, %v963_v35  ;;  %v1030_v40 = vmul.f32 0.044715, %v1028_v36 }
 0x110   : > { %v968_v41 = vmul.f32 0.7978846, %v966_v37  ;;  %v1033_v42 = vmul.f32 0.7978846, %v1031_v38  ;;  %v967_v43 = vadd.f32 %v965_v39, %v957_v25  ;;  %v1032_v44 = vadd.f32 %v1030_v40, %v1022_v26 }
 0x112   : > { %3201 = vtanh.f32 %v968_v41  ;;  %v969_v45 = vmul.f32 0.7978846, %v967_v43  ;;  %v1034_v46 = vmul.f32 0.7978846, %v1032_v44 }
 0x113   : > { %3203 = vtanh.f32 %v1033_v42 }
 0x114   : > { %3205 = vtanh.f32 %v969_v45 }
 0x115   : > { %3207 = vtanh.f32 %v1034_v46 }
 0x11c   : > { %v3202_v49 = vpop.eup %3201 }
 0x11d   : > { %v3204_v50 = vpop.eup %3203  ;;  %v972_v51 = vadd.f32 1.0, %v3202_v49  ;;  %v1298_v49 = vld [vmem:[%s3990_s28] sm:$0xff] }
 0x11e   : > { %v3206_v52 = vpop.eup %3205  ;;  %v1037_v53 = vadd.f32 1.0, %v3204_v50 }
 0x11f   : > { %v3208_v55 = vpop.eup %3207  ;;  %v974_v56 = vmul.f32 0.5, %v972_v51  ;;  %v973_v57 = vadd.f32 1.0, %v3206_v52 }
 0x120   : > { %v1039_v58 = vmul.f32 0.5, %v1037_v53  ;;  %v1038_v59 = vadd.f32 1.0, %v3208_v55 }
 0x121   : > { %v975_v60 = vmul.f32 0.5, %v973_v57  ;;  %v976_v2 = vmul.f32 %v974_v56, %v954_v17 }
 0x122   : > { %v1041_v62 = vmul.f32 %v1039_v58, %v1019_v18  ;;  %v1040_v63 = vmul.f32 0.5, %v1038_v59 }
 0x123   : > { %v977_v3 = vmul.f32 %v975_v60, %v957_v25 }
 0x124   : > { %v1042_v4 = vmul.f32 %v1040_v63, %v1022_v26  ;;  %v1072_v7 = vrot.slane %v1041_v62, 7 }
 0x125   : > { %v1093_v6 = vpack.c.bf16 %v977_v3, %v976_v2 }
 0x126   : > { %v1073_v8 = vrot.slane %v1042_v4, 7  ;;  %v1212_v9 = vpack.c.bf16 %v1042_v4, %v1041_v62 }
 0x127   : > { %3008 = vmatmul.mubr.msk.bf16.vlgmr.msra.gmra.mrb[4].mxu0 %vm1106_vm3, %v1093_v6 }
 0x128   : > { %3020 = vmatpush3.bf16.msra.mxu0 %v3198_v5  ;;  %v1075_v10 = vsel %vm1074_vm5, %v1072_v7, %v1073_v8  ;;  %v1076_v11 = vsel %vm1074_vm5, %v1073_v8, %v1072_v7  ;;  %3023 = vmatprep.mubr.msk.bf16.mxu0 %vm3294_vm2, %v3293_v1 }
 0x129   : > { %3021 = vmatprep.subr.bf16.mxu0 %v3293_v1  ;;  %v1081_v13 = vsel %vm1070_vm4, 0.0, %v1076_v11  ;;  %v1082_v14 = vsel %vm1071_vm6, 0.0, %v1075_v10  ;;  %v2892_v1 = vld [vmem:[%s3989_s25] ss:$0 sm:$0xff] }
 0x12a   : > { %v1087_v15 = vpack.c.bf16 %v1082_v14, %v1081_v13 }
 0x12c   : > { %3016 = vmatmul.mubr.msk.bf16.vlgmr.msra.gmra.mrb[4].mxu1 %vm1106_vm3, %v1087_v15  ;;  %3022 = vmatpush3.bf16.msra.mxu0 %v3200_v12 }
 0x12f   : > { %3024 = vmatmul.mubr.msk.bf16.vlgmr.msra.gmra.mrb[8].mxu0 %vm1106_vm3, %v1212_v9 }
 0x1fa   : > { %v1144_v16 = vpop.f32.mrb[4].mxu0 }
 0x1fb   : > { %v3009_v17 = vpop.f32.mrb[5].mxu0 }
 0x1fc   : > { %v1147_v18 = vpop.f32.mrb[6].mxu0 }
 0x1fd   : > { %v3010_v19 = vpop.f32.mrb[7].mxu0 }
 0x1ff   : > { %v1200_v20 = vpop.f32.mrb[4].mxu1 }
 0x200   : > { %v1201_v21 = vadd.f32 %v1200_v20, %v1144_v16  ;;  %v3017_v22 = vpop.f32.mrb[5].mxu1 }
 0x201   : > { %v1203_v23 = vpop.f32.mrb[6].mxu1 }
 0x202   : > { %v1204_v24 = vadd.f32 %v1203_v23, %v1147_v18  ;;  %v3018_v25 = vpop.f32.mrb[7].mxu1  ;;  %v1262_v26 = vpop.f32.mrb[8].mxu0 }
 0x203   : > { %v1269_v27 = vadd.f32 %v1262_v26, %v1201_v21  ;;  %v3025_v28 = vpop.f32.mrb[9].mxu0 }
 0x204   : > { %v1265_v29 = vpop.f32.mrb[10].mxu0 }
 0x205   : > { %v1278_v30 = vadd.f32 %v2892_v1, %v1269_v27  ;;  %v1270_v31 = vadd.f32 %v1265_v29, %v1204_v24  ;;  %v3026_v32 = vpop.f32.mrb[11].mxu0 }
 0x207   : > { %v1280_v33 = vmul.f32 %v1278_v30, %v1278_v30  ;;  %v1279_v34 = vadd.f32 %v2892_v1, %v1270_v31 }
 0x209   : > { %v1282_v35 = vmul.f32 %v1280_v33, %v1278_v30  ;;  %v1281_v36 = vmul.f32 %v1279_v34, %v1279_v34 }
 0x20b   : > { %v1284_v37 = vmul.f32 0.044715, %v1282_v35  ;;  %v1283_v38 = vmul.f32 %v1281_v36, %v1279_v34 }
 0x20d   : > { %v1286_v39 = vadd.f32 %v1284_v37, %v1278_v30  ;;  %v1285_v40 = vmul.f32 0.044715, %v1283_v38 }
 0x20f   : > { %v1288_v41 = vmul.f32 0.7978846, %v1286_v39  ;;  %v1287_v42 = vadd.f32 %v1285_v40, %v1279_v34 }
 0x211   : > { %3209 = vtanh.f32 %v1288_v41  ;;  %v1289_v43 = vmul.f32 0.7978846, %v1287_v42 }
 0x213   : > { %3211 = vtanh.f32 %v1289_v43 }
 0x21b   : > { %v3210_v44 = vpop.eup %3209 }
 0x21c   : > { %v1292_v45 = vadd.f32 1.0, %v3210_v44 }
 0x21d   : > { %v3212_v46 = vpop.eup %3211 }
 0x21e   : > { %v1294_v47 = vmul.f32 0.5, %v1292_v45  ;;  %v1293_v48 = vadd.f32 1.0, %v3212_v46 }
 0x220   : > { %v1296_v50 = vmul.f32 %v1294_v47, %v1278_v30  ;;  %v1295_v51 = vmul.f32 0.5, %v1293_v48 }
 0x222   : > { %v1299_v52 = vadd.f32 %v1298_v49, %v1296_v50  ;;  %v1297_v53 = vmul.f32 %v1295_v51, %v1279_v34 }
 0x224   : > { %1301 = vst.msk [vmem:[#allocation2] sm:$0xff] %vm1106_vm3, %v1299_v52  ;;  %v1300_v54 = vadd.f32 %v1298_v49, %v1297_v53 }
 0x226   : > { %1302 = vst.msk [vmem:[#allocation2 + $0x8] sm:$0xff] %vm1106_vm3, %v1300_v54 }
 0x227 PF: > { %vm1306_vm7 = vcmask 261120   ;;  %v3213_v6 = vld [vmem:[%s3461_s9] sm:$0xff]   ;;  %v3295_v7 = vmov 0.0   ;;  %v3214_v8 = vld [vmem:[%s3461_s9 + $0x8] sm:$0xff]   ;;  %vm3296_vm8 = vmmov 0   ;;  %v1334_v13 = vlaneseq  ;;  %s3991_s21 = sld [smem:[#allocation16_spill]]  ;;  %s3993_s28 = scalar_lea.vmem %s3943_s13, %s3449_s6 }
 0x228   : > { %3027 = vmatprep.subr.bf16.mxu1 %v3295_v7  ;;  %3041 = vmatprep.subr.bf16.mxu0 %v3295_v7  ;;  %v3593_v18 = vld [vmem:[%s3456_s8] sm:$0xf]  ;;  %s3297_s23 = smov 96   ;;  %vm1423_vm9 = vcmask 130048   ;;  %vm1519_vm10 = vcmask 64512   ;;  %s3298_s26 = smov 64  }
 0x229   : > { %3028 = vmatpush3.bf16.msra.mxu1 %v3213_v6  ;;  %3031 = vmatprep.mubr.msk.bf16.mxu1 %vm3296_vm8, %v3295_v7  ;;  %v3589_v16 = vshrl.u32 %v1334_v13, 7  ;;  %s3299_s27 = smov 80   ;;  %vm1549_vm11 = vcmask 1043456   ;;  %s3300_s25 = smov 112   ;;  %vm2131_vm12 = vcmask 523264  }
 0x22a   : > { %3029 = vmatprep.subr.bf16.mxu1 %v3295_v7  ;;  %3043 = vmatprep.mubr.msk.bf16.mxu0 %vm3296_vm8, %v3295_v7  ;;  %s3301_s4 = smov 48   ;;  %s3994_s9 = scalar_lea.vmem %s3945_s15, %s3449_s6 }
 0x22b   : > { %v3566_v55 = vld [vmem:[#allocation2] sm:$0xff]  ;;  %v1336_v17 = vsub.s32 0, %v3589_v16  ;;  %v1342_v22 = vsub.s32 1, %v3589_v16  ;;  %p2920_p5 = scmp.ne.s32.totalorder %s3443_s2, 1 }
 0x22c   : > { %v1307_v57 = vsel %vm1306_vm7, %v3566_v55, 0.0  ;;  %vm2329_vm15 = vcmask (!%p2920_p5), 1041409   ;;  %vm2333_vm1 = vcmask (!%p2920_p5), 230400   ;;  %vm2568_vm2 = vcmask (!%p2920_p5), 1041408  }
 0x22d   : > { %v3568_v56 = vld [vmem:[#allocation2 + $0x8] sm:$0xff]  ;;  %1308 = vadd.xlane.f32.xlu0 %v1307_v57  ;;  %3030 = vmatpush3.bf16.msra.mxu1 %v3214_v8  ;;  %v1337_v21 = vrot.slane %v3593_v18, %v1336_v17  ;;  %v1343_v26 = vrot.slane %v3593_v18, %v1342_v22  ;;  %s3992_s24 = scalar_lea.vmem %s3991_s21, %s3449_s6  ;;  %vm3305_vm3 = vmmov (!%p2920_p5), 0   ;;  %vm2548_vm4 = vcmask (!%p2920_p5), 7168  }
 0x22e   : > { %v1310_v58 = vsel %vm1306_vm7, %v3568_v56, 0.0  ;;  %3035 = vmatprep.subr.bf16.mxu1 %v3295_v7  ;;  %v2893_v30 = vld [vmem:[%s3992_s24] ss:$0 sm:$0xff]  ;;  %s3302_s24 = smov (!%p2920_p5), 127   ;;  %vm2550_vm5 = vcmask (!%p2920_p5), 15360   ;;  %vm2552_vm6 = vcmask (!%p2920_p5), 23552  }
 0x231   : > { %1311 = vadd.xlane.f32.xlu0 %v1310_v58 }
 0x2ba   : > { %v1309_v59 = vpop.xlane.xlu0 %1308 }
 0x2bb   : > { %v1314_v60 = vmul.f32 0.03125, %v1309_v59 }
 0x2bd   : > { %v1316_v61 = vsub.f32 %v3566_v55, %v1314_v60 }
 0x2be   : > { %v1312_v62 = vpop.xlane.xlu0 %1311 }
 0x2bf   : > { %v1315_v63 = vmul.f32 0.03125, %v1312_v62  ;;  %v1318_v0 = vmul.f32 %v1316_v61, %v1316_v61 }
 0x2c1   : > { %v1317_v2 = vsub.f32 %v3568_v56, %v1315_v63  ;;  %v1320_v3 = vsel %vm1306_vm7, %v1318_v0, 0.0 }
 0x2c2   : > { %1321 = vadd.xlane.f32.xlu1 %v1320_v3 }
 0x2c3   : > { %v1319_v4 = vmul.f32 %v1317_v2, %v1317_v2 }
 0x2c5   : > { %v1323_v5 = vsel %vm1306_vm7, %v1319_v4, 0.0 }
 0x2c6   : > { %1324 = vadd.xlane.f32.xlu1 %v1323_v5 }
 0x34f   : > { %v1322_v9 = vpop.xlane.xlu1 %1321 }
 0x350   : > { %v1326_v10 = vmul.f32 0.03125, %v1322_v9 }
 0x352   : > { %v1328_v11 = vadd.f32 1e-05, %v1326_v10 }
 0x353   : > { %v1325_v12 = vpop.xlane.xlu1 %1324 }
 0x354   : > { %3223 = vrsqrt.f32 %v1328_v11  ;;  %v1327_v14 = vmul.f32 0.03125, %v1325_v12 }
 0x356   : > { %v1329_v15 = vadd.f32 1e-05, %v1327_v14 }
 0x358   : > { %3225 = vrsqrt.f32 %v1329_v15 }
 0x35e   : > { %v3224_v19 = vpop.eup %3223 }
 0x35f   : > { %v1332_v20 = vmul.f32 %v3224_v19, %v1316_v61 }
 0x361   : > { %v1338_v25 = vmul.f32 %v1337_v21, %v1332_v20 }
 0x362   : > { %v3226_v23 = vpop.eup %3225 }
 0x363   : > { %v1333_v24 = vmul.f32 %v3226_v23, %v1317_v2  ;;  %v1344_v27 = vadd.f32 %v1343_v26, %v1338_v25 }
 0x365   : > { %v1339_v1 = vmul.f32 %v1337_v21, %v1333_v24 }
 0x367   : > { %v1345_v28 = vadd.f32 %v1343_v26, %v1339_v1 }
 0x369   : > { %v1350_v29 = vpack.c.bf16 %v1345_v28, %v1344_v27 }
 0x36b   : > { %3032 = vmatmul.mubr.msk.bf16.vlgmr.msra.gmra.mrb[0].mxu1 %vm1306_vm7, %v1350_v29 }
 0x36c   : > { %3037 = vmatprep.mubr.msk.bf16.mxu1 %vm3296_vm8, %v3295_v7 }
 0x43e   : > { %v1407_v31 = vpop.f32.mrb[0].mxu1 }
 0x43f   : > { %v1408_v32 = vadd.f32 %v2893_v30, %v1407_v31  ;;  %v3033_v33 = vpop.f32.mrb[1].mxu1 }
 0x440   : > { %v1410_v34 = vpop.f32.mrb[2].mxu1 }
 0x441   : > { %v3610_v35 = vpack.c.bf16 %v1408_v32, %v1408_v32  ;;  %v1411_v36 = vadd.f32 %v2893_v30, %v1410_v34  ;;  %v3034_v37 = vpop.f32.mrb[3].mxu1 }
 0x443   : > { %v3612_v38 = vpack.c.bf16 %v1411_v36, %v1411_v36  ;;  %1421 = vrot.lane.b32.xlu0 %v3610_v35, %s3297_s23 }
 0x445   : > { %1471 = vrot.lane.b32.xlu1 %v3612_v38, %s3297_s23  ;;  %s3303_s23 = smov (!%p2920_p5), 126  }
 0x4b5   : > { %v1422_v39 = vpop.permute.xlu0 %1421 }
 0x4b6   : > { %v1428_v40 = vsel %vm1423_vm9, %v1422_v39, 0 }
 0x4b7   : > { %3036 = vmatpush3.bf16.xpose.msra.mxu1 %v1428_v40  ;;  %v1472_v41 = vpop.permute.xlu1 %1471 }
 0x4b8   : > { %v1477_v42 = vsel %vm1423_vm9, %v1472_v41, 0  ;;  %3047 = vmatprep.subr.bf16.mxu1 %v3295_v7 }
 0x4b9   : > { %3042 = vmatpush3.bf16.xpose.msra.mxu0 %v1477_v42 }
 0x4ba   : > { %3053 = vmatprep.subr.bf16.mxu0 %v3295_v7 }
 0x4be   : > { %3038 = vmatmul.mubr.msk.bf16.vlgmr.msra.gmra.mrb[4].mxu1 %vm1423_vm9, %v3610_v35 }
 0x4bf   : > { %3049 = vmatprep.mubr.msk.bf16.mxu1 %vm3296_vm8, %v3295_v7 }
 0x4c0   : > { %3044 = vmatmul.mubr.msk.bf16.vlgmr.msra.gmra.mrb[0].mxu0 %vm1423_vm9, %v3612_v38 }
 0x4c1   : > { %3055 = vmatprep.mubr.msk.bf16.mxu0 %vm3296_vm8, %v3295_v7 }
 0x591   : > { %v1464_v43 = vpop.f32.mrb[4].mxu1 }
 0x592   : > { %v3039_v44 = vpop.f32.mrb[5].mxu1  ;;  %v1520_v45 = vsel %vm1519_vm10, %v1464_v43, -inf }
 0x593   : > { %v1513_v46 = vpop.f32.mrb[0].mxu0  ;;  %1521 = vmax.xlane.f32.xlu1 %v1520_v45  ;;  %v1467_v47 = vpop.f32.mrb[6].mxu1 }
 0x594   : > { %v3040_v48 = vpop.f32.mrb[7].mxu1  ;;  %v3045_v49 = vpop.f32.mrb[1].mxu0  ;;  %v1523_v50 = vsel %vm1519_vm10, %v1513_v46, -inf }
 0x595   : > { %1524 = vmax.xlane.f32.xlu0 %v1523_v50  ;;  %v1516_v51 = vpop.f32.mrb[2].mxu0 }
 0x596   : > { %v3046_v52 = vpop.f32.mrb[3].mxu0 }
 0x5a4   : > { %1593 = vrot.lane.b32.xlu1 %v3612_v38, %s3298_s26 }
 0x5a8   : > { %1644 = vrot.lane.b32.xlu1 %v3610_v35, %s3299_s27 }
 0x620   : > { %v1522_v53 = vpop.xlane.xlu1 %1521 }
 0x621   : > { %v1526_v54 = vsub.f32 %v1464_v43, %v1522_v53 }
 0x622   : > { %v1525_v57 = vpop.xlane.xlu0 %1524 }
 0x623   : > { %v1528_v58 = vmul.f32 1.442695, %v1526_v54  ;;  %v1527_v59 = vsub.f32 %v1513_v46, %v1525_v57 }
 0x624   : > { %v1594_v60 = vpop.permute.xlu1 %1593 }
 0x625   : > { %3227 = vpow2.f32 %v1528_v58  ;;  %v1530_v61 = vmul.f32 1.442695, %v1527_v59  ;;  %v1599_v62 = vsel %vm1549_vm11, %v1594_v60, 0 }
 0x626   : > { %3054 = vmatpush3.bf16.msra.mxu0 %v1599_v62 }
 0x627   : > { %3229 = vpow2.f32 %v1530_v61  ;;  %3065 = vmatprep.subr.bf16.mxu0 %v3295_v7 }
 0x628   : > { %v1645_v4 = vpop.permute.xlu1 %1644 }
 0x629   : > { %v1650_v20 = vsel %vm1423_vm9, %v1645_v4, 0 }
 0x62f   : > { %v3228_v63 = vpop.eup %3227 }
 0x630   : > { %v1532_v0 = vsel %vm1519_vm10, %v3228_v63, 0.0 }
 0x631   : > { %v3230_v2 = vpop.eup %3229  ;;  %1533 = vadd.xlane.f32.xlu0 %v1532_v0 }
 0x632   : > { %v1535_v3 = vsel %vm1519_vm10, %v3230_v2, 0.0 }
 0x633   : > { %1536 = vadd.xlane.f32.xlu1 %v1535_v3 }
 0x644   : > { %1694 = vrot.lane.b32.xlu1 %v3612_v38, %s3299_s27 }
 0x647   : > { %1544 = vrot.lane.b32.xlu0 %v3610_v35, %s3298_s26 }
 0x648   : > { %1692 = vrot.lane.b32.xlu1 %v3612_v38, %s3300_s25 }
 0x64b   : > { %1642 = vrot.lane.b32.xlu0 %v3610_v35, %s3300_s25 }
 0x6be   : > { %v1534_v5 = vpop.xlane.xlu0 %1533 }
 0x6bf   : > { %3231 = vrcp.f32 %v1534_v5  ;;  %v3215_v5 = vld [vmem:[%s3470_s20] sm:$0xff]  }
 0x6c0   : > { %v1537_v6 = vpop.xlane.xlu1 %1536 }
 0x6c1   : > { %3233 = vrcp.f32 %v1537_v6  ;;  %v3216_v6 = vld [vmem:[%s3470_s20 + $0x8] sm:$0xff]  }
 0x6c2   : > { %v1545_v8 = vpop.permute.xlu0 %1544 }
 0x6c3   : > { %v1551_v9 = vsel %vm1549_vm11, %v1545_v8, 0 }
 0x6c4   : > { %3048 = vmatpush3.bf16.msra.mxu1 %v1551_v9  ;;  %v1695_v19 = vpop.permute.xlu1 %1694 }
 0x6c5   : > { %3059 = vmatprep.subr.bf16.mxu1 %v3295_v7  ;;  %v1700_v23 = vsel %vm1423_vm9, %v1695_v19, 0 }
 0x6c6   : > { %v1643_v24 = vpop.permute.xlu0 %1642 }
 0x6c8   : > { %v1693_v25 = vpop.permute.xlu1 %1692 }
 0x6c9   : > { %v3232_v10 = vpop.eup %3231 }
 0x6ca   : > { %v1540_v11 = vmul.f32 %v3232_v10, %v3228_v63 }
 0x6cb   : > { %v3234_v12 = vpop.eup %3233 }
 0x6cc   : > { %v1541_v14 = vmul.f32 %v3234_v12, %v3230_v2  ;;  %v1542_v15 = vpack.c.bf16 %v1540_v11, %v1540_v11 }
 0x6ce   : > { %3050 = vmatmul.mubr.msk.bf16.vlgmr.msra.gmra.mrb[8].mxu1 %vm1519_vm10, %v1542_v15  ;;  %v1543_v21 = vpack.c.bf16 %v1541_v14, %v1541_v14 }
 0x6cf   : > { %3060 = vmatpush3.bf16.xpose.msra.mxu1 %v1650_v20  ;;  %3061 = vmatprep.mubr.msk.bf16.mxu1 %vm3296_vm8, %v3295_v7 }
 0x6d0   : > { %3056 = vmatmul.mubr.msk.bf16.vlgmr.msra.gmra.mrb[4].mxu0 %vm1519_vm10, %v1543_v21  ;;  %3071 = vmatprep.subr.bf16.mxu1 %v3295_v7 }
 0x6d1   : > { %3066 = vmatpush3.bf16.xpose.msra.mxu0 %v1700_v23  ;;  %3067 = vmatprep.mubr.msk.bf16.mxu0 %vm3296_vm8, %v3295_v7 }
 0x6d2   : > { %3077 = vmatprep.subr.bf16.mxu0 %v3295_v7 }
 0x6d6   : > { %3062 = vmatmul.mubr.msk.bf16.vlgmr.msra.gmra.mrb[12].mxu1 %vm1423_vm9, %v1643_v24 }
 0x6d7   : > { %3073 = vmatprep.mubr.msk.bf16.mxu1 %vm3296_vm8, %v3295_v7 }
 0x6d8   : > { %3068 = vmatmul.mubr.msk.bf16.vlgmr.msra.gmra.mrb[8].mxu0 %vm1423_vm9, %v1693_v25 }
 0x6d9   : > { %3079 = vmatprep.mubr.msk.bf16.mxu0 %vm3296_vm8, %v3295_v7 }
 0x7a1   : > { %v3658_v26 = vpop.f32.mrb[8].mxu1 }
 0x7a2   : > { %v3051_v1 = vpop.f32.mrb[9].mxu1 }
 0x7a3   : > { %v1590_v27 = vpop.f32.mrb[10].mxu1  ;;  %v1635_v28 = vpop.f32.mrb[4].mxu0 }
 0x7a4   : > { %v1641_v29 = vpack.c.bf16 %v1635_v28, %v3658_v26  ;;  %v3052_v30 = vpop.f32.mrb[11].mxu1  ;;  %v3057_v31 = vpop.f32.mrb[5].mxu0  ;;  %v2909_v28 = vld [vmem:[%s867_s3] ss:$0 sm:$0xff] }
 0x7a5   : > { %v1638_v32 = vpop.f32.mrb[6].mxu0 }
 0x7a6   : > { %v3058_v33 = vpop.f32.mrb[7].mxu0 }
 0x7a9   : > { %v1686_v34 = vpop.f32.mrb[12].mxu1 }
 0x7aa   : > { %v3063_v36 = vpop.f32.mrb[13].mxu1  ;;  %v1742_v37 = vsel %vm1519_vm10, %v1686_v34, -inf }
 0x7ab   : > { %v1736_v39 = vpop.f32.mrb[8].mxu0  ;;  %1743 = vmax.xlane.f32.xlu0 %v1742_v37  ;;  %v1689_v40 = vpop.f32.mrb[14].mxu1 }
 0x7ac   : > { %v3064_v41 = vpop.f32.mrb[15].mxu1  ;;  %v3069_v42 = vpop.f32.mrb[9].mxu0  ;;  %v1745_v43 = vsel %vm1519_vm10, %v1736_v39, -inf }
 0x7ad   : > { %1746 = vmax.xlane.f32.xlu1 %v1745_v43  ;;  %v1739_v44 = vpop.f32.mrb[10].mxu0 }
 0x7ae   : > { %v3070_v45 = vpop.f32.mrb[11].mxu0 }
 0x7be   : > { %1814 = vrot.lane.b32.xlu1 %v3612_v38, %s3301_s4 }
 0x838   : > { %v1744_v46 = vpop.xlane.xlu0 %1743 }
 0x839   : > { %v1748_v47 = vsub.f32 %v1686_v34, %v1744_v46 }
 0x83a   : > { %v1747_v48 = vpop.xlane.xlu1 %1746 }
 0x83b   : > { %v1750_v49 = vmul.f32 1.442695, %v1748_v47  ;;  %v1749_v50 = vsub.f32 %v1736_v39, %v1747_v48  ;;  %v3217_v48 = vld [vmem:[%s3479_s1] sm:$0xff]  }
 0x83d   : > { %3235 = vpow2.f32 %v1750_v49  ;;  %v1752_v51 = vmul.f32 1.442695, %v1749_v50  ;;  %v3218_v49 = vld [vmem:[%s3479_s1 + $0x8] sm:$0xff]  }
 0x83e   : > { %v1815_v52 = vpop.permute.xlu1 %1814 }
 0x83f   : > { %3237 = vpow2.f32 %v1752_v51  ;;  %v1820_v53 = vsel %vm1549_vm11, %v1815_v52, 0 }
 0x840   : > { %3078 = vmatpush3.bf16.msra.mxu0 %v1820_v53 }
 0x841   : > { %3089 = vmatprep.subr.bf16.mxu0 %v3295_v7 }
 0x847   : > { %v3236_v54 = vpop.eup %3235 }
 0x848   : > { %v1754_v57 = vsel %vm1519_vm10, %v3236_v54, 0.0 }
 0x849   : > { %v3238_v58 = vpop.eup %3237  ;;  %1755 = vadd.xlane.f32.xlu0 %v1754_v57 }
 0x84a   : > { %v1757_v38 = vsel %vm1519_vm10, %v3238_v58, 0.0 }
 0x84d   : > { %1758 = vadd.xlane.f32.xlu0 %v1757_v38 }
 0x863   : > { %1766 = vrot.lane.b32.xlu0 %v3610_v35, %s3301_s4 }
 0x8d6   : > { %v1756_v59 = vpop.xlane.xlu0 %1755 }
 0x8d7   : > { %3239 = vrcp.f32 %v1756_v59  ;;  %v2008_v59 = vsub.s32 3, %v3589_v16 }
 0x8da   : > { %v1759_v60 = vpop.xlane.xlu0 %1758 }
 0x8db   : > { %3241 = vrcp.f32 %v1759_v60 }
 0x8de   : > { %v1767_v61 = vpop.permute.xlu0 %1766 }
 0x8df   : > { %v1772_v62 = vsel %vm1549_vm11, %v1767_v61, 0 }
 0x8e0   : > { %3072 = vmatpush3.bf16.msra.mxu1 %v1772_v62 }
 0x8e1   : > { %v3240_v63 = vpop.eup %3239  ;;  %3083 = vmatprep.subr.bf16.mxu1 %v3295_v7 }
 0x8e2   : > { %v1762_v0 = vmul.f32 %v3240_v63, %v3236_v54 }
 0x8e4   : > { %v1764_v2 = vpack.c.bf16 %v1762_v0, %v1762_v0 }
 0x8e5   : > { %v3242_v3 = vpop.eup %3241 }
 0x8e6   : > { %v1763_v4 = vmul.f32 %v3242_v3, %v3238_v58  ;;  %3074 = vmatmul.mubr.msk.bf16.vlgmr.msra.gmra.mrb[16].mxu1 %vm1519_vm10, %v1764_v2  ;;  %v2002_v58 = vsub.s32 2, %v3589_v16  ;;  %v2009_v2 = vrot.slane %v3593_v18, %v2008_v59 }
 0x8e7   : > { %3085 = vmatprep.mubr.msk.bf16.mxu1 %vm3296_vm8, %v3295_v7  ;;  %3084 = vmatpush3.bf16.msra.mxu1 %v3216_v6  ;;  %v3219_v6 = vld [vmem:[%s3489_s22] sm:$0xff]  }
 0x8e8   : > { %v1765_v35 = vpack.c.bf16 %v1763_v4, %v1763_v4  ;;  %3095 = vmatprep.subr.bf16.mxu1 %v3295_v7  ;;  %v2003_v38 = vrot.slane %v3593_v18, %v2002_v58  ;;  %v3222_v18 = vld [vmem:[%s3489_s22 + $0x18] sm:$0xff]  }
 0x8ea   : > { %3080 = vmatmul.mubr.msk.bf16.vlgmr.msra.gmra.mrb[12].mxu0 %vm1519_vm10, %v1765_v35 }
 0x8eb   : > { %3090 = vmatpush3.bf16.msra.mxu0 %v3215_v5  ;;  %3091 = vmatprep.mubr.msk.bf16.mxu0 %vm3296_vm8, %v3295_v7 }
 0x8ec   : > { %3103 = vmatprep.subr.bf16.mxu0 %v3295_v7 }
 0x8f2   : > { %3092 = vmatmul.mubr.msk.bf16.vlgmr.msra.gmra.mrb[16].mxu0 %vm1423_vm9, %v1641_v29 }
 0x8f3   : > { %3111 = vmatprep.mubr.msk.bf16.mxu0 %vm3296_vm8, %v3295_v7  ;;  %3104 = vmatpush3.bf16.msra.mxu0 %v3219_v6 }
 0x8f4   : > { %3105 = vmatprep.subr.bf16.mxu0 %v3295_v7 }
 0x9b9   : > { %v1808_v8 = vpop.f32.mrb[16].mxu1 }
 0x9ba   : > { %v3075_v9 = vpop.f32.mrb[17].mxu1 }
 0x9bb   : > { %v1811_v10 = vpop.f32.mrb[18].mxu1  ;;  %v3221_v9 = vld [vmem:[%s3489_s22 + $0x10] sm:$0xff]  }
 0x9bc   : > { %v3076_v11 = vpop.f32.mrb[19].mxu1  ;;  %v2910_v10 = vld [vmem:[%s3993_s28] ss:$0 sm:$0xff] }
 0x9bd   : > { %v1856_v12 = vpop.f32.mrb[12].mxu0 }
 0x9be   : > { %v1862_v14 = vpack.c.bf16 %v1856_v12, %v1808_v8  ;;  %v3081_v15 = vpop.f32.mrb[13].mxu0  ;;  %v3220_v8 = vld [vmem:[%s3489_s22 + $0x8] sm:$0xff]  }
 0x9bf   : > { %v1859_v19 = vpop.f32.mrb[14].mxu0  ;;  %3106 = vmatpush3.bf16.msra.mxu0 %v3220_v8  ;;  %v2408_v8 = vld [vmem:[%s3948_s18 + $0x2] sm:$0x1] (!%p2920_p5) }
 0x9c0   : > { %v3082_v20 = vpop.f32.mrb[15].mxu0  ;;  %3086 = vmatmul.mubr.msk.bf16.vlgmr.msra.gmra.mrb[20].mxu1 %vm1423_vm9, %v1862_v14  ;;  %3107 = vmatprep.subr.bf16.mxu0 %v3295_v7 }
 0x9c1   : > { %3099 = vmatprep.mubr.msk.bf16.mxu1 %vm3296_vm8, %v3295_v7  ;;  %3096 = vmatpush3.bf16.msra.mxu1 %v3217_v48  ;;  %vm2724_vm8 = vcmask (!%p2920_p5), 17408  }
 0x9c2   : > { %3097 = vmatprep.subr.bf16.mxu1 %v3295_v7 }
 0x9c3   : > { %3108 = vmatpush3.bf16.msra.mxu0 %v3221_v9 }
 0x9c4   : > { %3109 = vmatprep.subr.bf16.mxu0 %v3295_v7 }
 0x9c5   : > { %v1956_v21 = vpop.f32.mrb[16].mxu0  ;;  %3098 = vmatpush3.bf16.msra.mxu1 %v3218_v49 }
 0x9c6   : > { %v3093_v23 = vpop.f32.mrb[17].mxu0 }
 0x9c7   : > { %v1959_v24 = vpop.f32.mrb[18].mxu0  ;;  %3110 = vmatpush3.bf16.msra.mxu0 %v3222_v18 }
 0x9c8   : > { %v3094_v25 = vpop.f32.mrb[19].mxu0 }
 0xa93   : > { %v1906_v26 = vpop.f32.mrb[20].mxu1 }
 0xa94   : > { %v1957_v1 = vadd.f32 %v1956_v21, %v1906_v26  ;;  %v3087_v27 = vpop.f32.mrb[21].mxu1 }
 0xa95   : > { %v1909_v29 = vpop.f32.mrb[22].mxu1 }
 0xa96   : > { %v1963_v30 = vadd.f32 %v1957_v1, %v3566_v55  ;;  %v1960_v31 = vadd.f32 %v1959_v24, %v1909_v29  ;;  %v3088_v32 = vpop.f32.mrb[23].mxu1 }
 0xa98   : > { %v3693_v33 = vadd.f32 %v2909_v28, %v1963_v30  ;;  %v1964_v34 = vadd.f32 %v1960_v31, %v3568_v56 }
 0xa9a   : > { %v3696_v36 = vadd.f32 %v2909_v28, %v1964_v34  ;;  %v1974_v37 = vsel %vm1306_vm7, %v3693_v33, 0.0 }
 0xa9b   : > { %1975 = vadd.xlane.f32.xlu1 %v1974_v37 }
 0xa9c   : > { %v1977_v39 = vsel %vm1306_vm7, %v3696_v36, 0.0 }
 0xa9d   : > { %1978 = vadd.xlane.f32.xlu0 %v1977_v39 }
 0xb28   : > { %v1976_v40 = vpop.xlane.xlu1 %1975 }
 0xb29   : > { %v1980_v55 = vmul.f32 0.03125, %v1976_v40 }
 0xb2a   : > { %v1979_v41 = vpop.xlane.xlu0 %1978 }
 0xb2b   : > { %v1982_v42 = vsub.f32 %v3693_v33, %v1980_v55  ;;  %v1981_v43 = vmul.f32 0.03125, %v1979_v41 }
 0xb2d   : > { %v1983_v56 = vsub.f32 %v3696_v36, %v1981_v43  ;;  %v1984_v44 = vmul.f32 %v1982_v42, %v1982_v42  ;;  %v2919_v43 = vld [vmem:[%s3994_s9] ss:$0 sm:$0xff] }
 0xb2f   : > { %v1986_v45 = vsel %vm1306_vm7, %v1984_v44, 0.0  ;;  %v1985_v46 = vmul.f32 %v1983_v56, %v1983_v56 }
 0xb30   : > { %1987 = vadd.xlane.f32.xlu0 %v1986_v45 }
 0xb31   : > { %v1989_v47 = vsel %vm1306_vm7, %v1985_v46, 0.0 }
 0xb32   : > { %1990 = vadd.xlane.f32.xlu1 %v1989_v47 }
 0xbbd   : > { %v1988_v50 = vpop.xlane.xlu0 %1987 }
 0xbbe   : > { %v1992_v51 = vmul.f32 0.03125, %v1988_v50 }
 0xbbf   : > { %v1991_v52 = vpop.xlane.xlu1 %1990 }
 0xbc0   : > { %v1994_v53 = vadd.f32 1e-05, %v1992_v51  ;;  %v1993_v54 = vmul.f32 0.03125, %v1991_v52  ;;  %v2339_v51 = vld [vmem:[%s3947_s17 + $0x1] sm:$0x1] (!%p2920_p5) }
 0xbc1   : > { %v2266_v52 = vld [vmem:[%s3948_s18] sm:$0x1] (!%p2920_p5) }
 0xbc2   : > { %3243 = vrsqrt.f32 %v1994_v53  ;;  %v1995_v57 = vadd.f32 1e-05, %v1993_v54  ;;  %v2409_v53 = vld [vmem:[%s3947_s17 + $0x2] sm:$0x1] (!%p2920_p5)  ;;  %v2479_v54 = vld [vmem:[%s3947_s17 + $0x3] sm:$0x1] (!%p2920_p5) }
 0xbc4   : > { %3245 = vrsqrt.f32 %v1995_v57 }
 0xbcc   : > { %v3244_v60 = vpop.eup %3243 }
 0xbcd   : > { %v1998_v61 = vmul.f32 %v3244_v60, %v1982_v42 }
 0xbce   : > { %v3246_v62 = vpop.eup %3245 }
 0xbcf   : > { %v2004_v63 = vmul.f32 %v2003_v38, %v1998_v61  ;;  %v1999_v0 = vmul.f32 %v3246_v62, %v1983_v56 }
 0xbd1   : > { %v2005_v3 = vmul.f32 %v2003_v38, %v1999_v0  ;;  %v2010_v4 = vadd.f32 %v2009_v2, %v2004_v63  ;;  %v2338_v38 = vld [vmem:[%s3948_s18 + $0x1] sm:$0x1] (!%p2920_p5) }
 0xbd3   : > { %v2011_v5 = vadd.f32 %v2009_v2, %v2005_v3 }
 0xbd5   : > { %v2016_v35 = vpack.c.bf16 %v2011_v5, %v2010_v4 }
 0xbd7   : > { %3100 = vmatmul.mubr.msk.bf16.vlgmr.msra.gmra.mrb[24].mxu1 %vm1306_vm7, %v2016_v35 }
 0xcaa   : > { %v2073_v11 = vpop.f32.mrb[24].mxu1 }
 0xcab   : > { %v2074_v12 = vadd.f32 %v2910_v10, %v2073_v11  ;;  %v3101_v14 = vpop.f32.mrb[25].mxu1 }
 0xcac   : > { %v2076_v15 = vpop.f32.mrb[26].mxu1 }
 0xcad   : > { %v2080_v19 = vmul.f32 %v2074_v12, %v2074_v12  ;;  %v2077_v20 = vadd.f32 %v2910_v10, %v2076_v15  ;;  %v3102_v21 = vpop.f32.mrb[27].mxu1  ;;  %v2478_v10 = vld [vmem:[%s3948_s18 + $0x3] sm:$0x1] (!%p2920_p5) }
 0xcaf   : > { %v2082_v23 = vmul.f32 %v2080_v19, %v2074_v12  ;;  %v2081_v24 = vmul.f32 %v2077_v20, %v2077_v20 }
 0xcb1   : > { %v2084_v25 = vmul.f32 0.044715, %v2082_v23  ;;  %v2083_v26 = vmul.f32 %v2081_v24, %v2077_v20  ;;  %v2193_v24 = vld [vmem:[%s3946_s16] sm:$0x3] (!%p2920_p5) }
 0xcb3   : > { %v2086_v1 = vadd.f32 %v2084_v25, %v2074_v12  ;;  %v2085_v7 = vmul.f32 0.044715, %v2083_v26  ;;  %v2223_v25 = vrot.slane (!%p2920_p5), %v2193_v24, %v1336_v17 }
 0xcb5   : > { %v2088_v27 = vmul.f32 0.7978846, %v2086_v1  ;;  %v2087_v28 = vadd.f32 %v2085_v7, %v2077_v20  ;;  %v2229_v7 = vrot.slane (!%p2920_p5), %v2193_v24, %v1342_v22 }
 0xcb7   : > { %3247 = vtanh.f32 %v2088_v27  ;;  %v2089_v29 = vmul.f32 0.7978846, %v2087_v28 }
 0xcb9   : > { %3249 = vtanh.f32 %v2089_v29 }
 0xcc1   : > { %v3248_v30 = vpop.eup %3247 }
 0xcc2   : > { %v2092_v31 = vadd.f32 1.0, %v3248_v30 }
 0xcc3   : > { %v3250_v32 = vpop.eup %3249 }
 0xcc4   : > { %v2094_v34 = vmul.f32 0.5, %v2092_v31  ;;  %v2093_v37 = vadd.f32 1.0, %v3250_v32 }
 0xcc6   : > { %v2095_v39 = vmul.f32 0.5, %v2093_v37  ;;  %v2096_v40 = vmul.f32 %v2094_v34, %v2074_v12 }
 0xcc8   : > { %v2097_v55 = vmul.f32 %v2095_v39, %v2077_v20 }
 0xcca   : > { %v2106_v41 = vpack.c.bf16 %v2097_v55, %v2096_v40 }
 0xccc   : > { %3112 = vmatmul.mubr.msk.bf16.vlgmr.msra.gmra.mrb[20].mxu0 %vm2131_vm12, %v2106_v41 }
 0xd9f   : > { %v2169_v42 = vpop.f32.mrb[20].mxu0 }
 0xda0   : > { %v2176_v56 = vadd.f32 %v2169_v42, %v3693_v33  ;;  %v3113_v44 = vpop.f32.mrb[21].mxu0  ;;  %2192 = sbr.rel (%p2920_p5) target bundleno = 4897 (0x1321), region = 128  ;;  %v2267_v33 = vld [vmem:[%s3947_s17] sm:$0x1] (!%p2920_p5) }
 0xda1   : > { %v2172_v45 = vpop.f32.mrb[22].mxu0  ;;  %2280 = vrot.lane.b32.xlu1 (!%p2920_p5), %v2267_v33, %s3302_s24  ;;  %3133 = vpush (!%p2920_p5), %v2267_v33 }
 0xda2   : > { %v2185_v46 = vadd.f32 %v2919_v43, %v2176_v56  ;;  %v2177_v47 = vadd.f32 %v2172_v45, %v3696_v36  ;;  %v3114_v48 = vpop.f32.mrb[23].mxu0  ;;  %3135 = vpush (!%p2920_p5), %v2266_v52 }
 0xda4   : > { %2187 = vst.msk [vmem:[#allocation2] sm:$0xff] %vm1306_vm7, %v2185_v46  ;;  %v2186_v49 = vadd.f32 %v2919_v43, %v2177_v47  ;;  %v2194_v36 = vsel (!%p2920_p5), %vm1306_vm7, %v2185_v46, 0.0 }
 0xda5   : > { %2297 = vrot.lane.b32.xlu1 (!%p2920_p5), %v2267_v33, %s3303_s23 }
 0xda6   : > { %2188 = vst.msk [vmem:[#allocation2 + $0x8] sm:$0xff] %vm1306_vm7, %v2186_v49  ;;  %v2197_v50 = vsel (!%p2920_p5), %vm1306_vm7, %v2186_v49, 0.0 }
 0xda7   : > { %2198 = vadd.xlane.f32.xlu0 %v2197_v50 }
 0xdab   : > { %2195 = vadd.xlane.f32.xlu0 %v2194_v36 }
 0xdc1   : > { %2352 = vrot.lane.b32.xlu0 %v2339_v51, %s3302_s24 }
 0xdc5   : > { %2369 = vrot.lane.b32.xlu0 %v2339_v51, %s3303_s23 }
 0xdc9   : > { %2422 = vrot.lane.b32.xlu0 %v2409_v53, %s3302_s24 }
 0xdcd   : > { %2439 = vrot.lane.b32.xlu0 %v2409_v53, %s3303_s23 }
 0xdd1   : > { %2492 = vrot.lane.b32.xlu0 %v2479_v54, %s3302_s24 }
 0xdd2   : > { %s3772_s26 = spop %3133 }
 0xdd3   : > { %s3777_s4 = spop %3135 }
 0xdd5   : > { %2509 = vrot.lane.b32.xlu0 %v2479_v54, %s3303_s23 }
 0xe13   : > { %v2281_v57 = vpop.permute.xlu1 %2280 }
 0xe14   : > { %3137 = vpush %v2281_v57 }
 0xe17   : > { %v2298_v58 = vpop.permute.xlu1 %2297 }
 0xe18   : > { %3139 = vpush %v2298_v58 }
 0xe19   : > { %3141 = vpush %v2339_v51 }
 0xe1a   : > { %3143 = vpush %v2338_v38 }
 0xe34   : > { %v2199_v59 = vpop.xlane.xlu0 %2198 }
 0xe35   : > { %v2201_v60 = vmul.f32 0.03125, %v2199_v59 }
 0xe37   : > { %v2203_v61 = vsub.f32 %v2186_v49, %v2201_v60 }
 0xe38   : > { %v2196_v62 = vpop.xlane.xlu0 %2195 }
 0xe39   : > { %v2200_v63 = vmul.f32 0.03125, %v2196_v62  ;;  %v2205_v0 = vmul.f32 %v2203_v61, %v2203_v61 }
 0xe3b   : > { %v2202_v2 = vsub.f32 %v2185_v46, %v2200_v63  ;;  %v2209_v3 = vsel %vm1306_vm7, %v2205_v0, 0.0  ;;  %v2270_v0 = vstv %s3772_s26 }
 0xe3c   : > { %2210 = vadd.xlane.f32.xlu1 %v2209_v3  ;;  %v2353_v4 = vpop.permute.xlu0 %2352 }
 0xe3d   : > { %v2204_v5 = vmul.f32 %v2202_v2, %v2202_v2  ;;  %3145 = vpush %v2353_v4 }
 0xe3f   : > { %v2206_v35 = vsel %vm1306_vm7, %v2204_v5, 0.0 }
 0xe40   : > { %2207 = vadd.xlane.f32.xlu1 %v2206_v35  ;;  %v2370_v6 = vpop.permute.xlu0 %2369 }
 0xe41   : > { %3147 = vpush %v2370_v6 }
 0xe42   : > { %3149 = vpush %v2409_v53 }
 0xe43   : > { %3151 = vpush %v2408_v8 }
 0xe44   : > { %v2423_v9 = vpop.permute.xlu0 %2422 }
 0xe45   : > { %3153 = vpush %v2423_v9  ;;  %s3781_s20 = spop %3137 }
 0xe46   : > { %v2283_v38 = vstv %s3781_s20  ;;  %s4002_s20 = sld [smem:[#allocation21_spill]] }
 0xe48   : > { %v2440_v18 = vpop.permute.xlu0 %2439 }
 0xe49   : > { %3155 = vpush %v2440_v18  ;;  %s3783_s29 = spop %3139 }
 0xe4a   : > { %3157 = vpush %v2479_v54  ;;  %s3787_s3 = spop %3141 }
 0xe4b   : > { %3159 = vpush %v2478_v10  ;;  %s3789_s1 = spop %3143  ;;  %v2342_v44 = vstv %s3787_s3 }
 0xe4c   : > { %v2493_v11 = vpop.permute.xlu0 %2492  ;;  %v2348_v53 = vstv %s3789_s1 }
 0xe4d   : > { %3161 = vpush %v2493_v11 }
 0xe50   : > { %v2510_v12 = vpop.permute.xlu0 %2509 }
 0xe51   : > { %3163 = vpush %v2510_v12 }
 0xe6e   : > { %s3791_s28 = spop %3145 }
 0xe6f   : > { %v2355_v49 = vstv %s3791_s28 }
 0xe72   : > { %s3794_s22 = spop %3147 }
 0xe73   : > { %s3796_s8 = spop %3149 }
 0xe74   : > { %s3799_s9 = spop %3151  ;;  %v2412_v47 = vstv %s3796_s8 }
 0xe75   : > { %v2418_v50 = vstv %s3799_s9 }
 0xe76   : > { %s3801_s6 = spop %3153 }
 0xe77   : > { %v2425_v57 = vstv %s3801_s6  ;;  %s3999_s6 = sld [smem:[#allocation20_spill]] }
 0xe7a   : > { %s3803_s21 = spop %3155 }
 0xe7b   : > { %s3805_s27 = spop %3157 }
 0xe7c   : > { %v2482_v48 = vstv %s3805_s27  ;;  %s3160_s25 = spop %3159 }
 0xe7d   : > { %v2488_v52 = vstv %s3160_s25  ;;  %s4000_s25 = sld [smem:[#allocation17_spill]] }
 0xe7e   : > { %s3819_s3 = spop %3161 }
 0xe7f   : > { %v2495_v11 = vstv %s3819_s3 }
 0xe82   : > { %s3164_s26 = spop %3163 }
 0xec9   : > { %v2211_v14 = vpop.xlane.xlu1 %2210 }
 0xeca   : > { %v2213_v15 = vmul.f32 0.03125, %v2211_v14  ;;  %v2300_v14 = vstv %s3783_s29  ;;  %s3997_s29 = sld [smem:[#allocation18_spill]] }
 0xecc   : > { %v2215_v19 = vadd.f32 1e-05, %v2213_v15 }
 0xecd   : > { %v2208_v20 = vpop.xlane.xlu1 %2207 }
 0xece   : > { %3251 = vrsqrt.f32 %v2215_v19  ;;  %v2212_v21 = vmul.f32 0.03125, %v2208_v20  ;;  %v2442_v19 = vstv %s3803_s21 }
 0xed0   : > { %v2214_v23 = vadd.f32 1e-05, %v2212_v21  ;;  %v2372_v21 = vstv %s3794_s22  ;;  %s3998_s1 = smov %s3997_s29 }
 0xed2   : > { %3253 = vrsqrt.f32 %v2214_v23 }
 0xed8   : > { %v3252_v26 = vpop.eup %3251 }
 0xed9   : > { %v2219_v1 = vmul.f32 %v3252_v26, %v2203_v61 }
 0xedb   : > { %v2225_v27 = vmul.f32 %v2223_v25, %v2219_v1  ;;  %v2512_v1 = vstv %s3164_s26 }
 0xedc   : > { %v3254_v28 = vpop.eup %3253 }
 0xedd   : > { %v2231_v29 = vadd.f32 %v2229_v7, %v2225_v27  ;;  %v2218_v30 = vmul.f32 %v3254_v28, %v2202_v2 }
 0xedf   : > { %v2239_v17 = vsel %vm1306_vm7, %v2231_v29, 0.0  ;;  %v2224_v31 = vmul.f32 %v2223_v25, %v2218_v30 }
 0xee0   : > { %v2240_v32 = vrot.slane %v2239_v17, 4 }
 0xee1   : > { %v2230_v34 = vadd.f32 %v2229_v7, %v2224_v31 }
 0xee2   : > { %v2241_v16 = vadd.f32 %v2240_v32, %v2239_v17 }
 0xee3   : > { %v2232_v22 = vsel %vm1306_vm7, %v2230_v34, 0.0  ;;  %vm2564_vm7 = vcmask 31744  }
 0xee4   : > { %v2242_v37 = vrot.slane %v2241_v16, 2  ;;  %v2233_v39 = vrot.slane %v2232_v22, 4 }
 0xee6   : > { %v2243_v40 = vadd.f32 %v2242_v37, %v2241_v16  ;;  %v2234_v55 = vadd.f32 %v2233_v39, %v2232_v22  ;;  %v2276_v16 = vstv %s3777_s4 }
 0xee8   : > { %v2244_v41 = vrot.slane %v2243_v40, 1  ;;  %v2235_v42 = vrot.slane %v2234_v55, 2 }
 0xeea   : > { %v2245_v43 = vadd.f32 %v2244_v41, %v2243_v40  ;;  %v2236_v56 = vadd.f32 %v2235_v42, %v2234_v55 }
 0xeec   : > { %v2248_v45 = vmul.f32 0.125, %v2245_v43  ;;  %v2237_v46 = vrot.slane %v2236_v56, 1 }
 0xeee   : > { %v2238_v33 = vadd.f32 %v2237_v46, %v2236_v56  ;;  %v2345_v36 = vmul.f32 %v2342_v44, %v2248_v45  ;;  %v2358_v51 = vmul.f32 %v2355_v49, %v2248_v45  ;;  %v2415_v54 = vmul.f32 %v2412_v47, %v2248_v45 }
 0xeef   : > { %v2485_v58 = vmul.f32 %v2482_v48, %v2248_v45  ;;  %v2286_v63 = vmul.f32 %v2283_v38, %v2248_v45  ;;  %v2428_v4 = vmul.f32 %v2425_v57, %v2248_v45  ;;  %v2273_v18 = vmul.f32 %v2270_v0, %v2248_v45 }
 0xef0   : > { %v2247_v59 = vmul.f32 0.125, %v2238_v33  ;;  %v2351_v60 = vadd.f32 %v2348_v53, %v2345_v36  ;;  %2363 = vrot.lane.b32.xlu0 %v2358_v51, %s3302_s24  ;;  %v2421_v61 = vadd.f32 %v2418_v50, %v2415_v54  ;;  %v2498_v15 = vmul.f32 %v2495_v11, %v2248_v45 }
 0xef1   : > { %v3816_v62 = vadd.f32 %v2488_v52, %v2485_v58  ;;  %2291 = vrot.lane.b32.xlu1 %v2286_v63, %s3302_s24  ;;  %v2303_v20 = vmul.f32 %v2300_v14, %v2248_v45  ;;  %v2445_v23 = vmul.f32 %v2442_v19, %v2248_v45  ;;  %v2375_v24 = vmul.f32 %v2372_v21, %v2248_v45 }
 0xef2   : > { %v2344_v2 = vmul.f32 %v2342_v44, %v2247_v59  ;;  %v2414_v3 = vmul.f32 %v2412_v47, %v2247_v59  ;;  %v2357_v5 = vmul.f32 %v2355_v49, %v2247_v59  ;;  %v2484_v35 = vmul.f32 %v2482_v48, %v2247_v59 }
 0xef3   : > { %v2272_v10 = vmul.f32 %v2270_v0, %v2247_v59  ;;  %v2285_v12 = vmul.f32 %v2283_v38, %v2247_v59  ;;  %v2374_v25 = vmul.f32 %v2372_v21, %v2247_v59  ;;  %v2427_v26 = vmul.f32 %v2425_v57, %v2247_v59 }
 0xef4   : > { %v2350_v6 = vadd.f32 %v2348_v53, %v2344_v2  ;;  %v3822_v8 = vadd.f32 %v2418_v50, %v2414_v3  ;;  %2433 = vrot.lane.b32.xlu0 %v2428_v4, %s3302_s24  ;;  %v3825_v9 = vadd.f32 %v2488_v52, %v2484_v35  ;;  %v2515_v7 = vmul.f32 %v2512_v1, %v2248_v45 }
 0xef5   : > { %2361 = vrot.lane.b32.xlu1 %v2357_v5, %s3302_s24  ;;  %v2302_v27 = vmul.f32 %v2300_v14, %v2247_v59  ;;  %v2514_v28 = vmul.f32 %v2512_v1, %v2247_v59  ;;  %v2497_v29 = vmul.f32 %v2495_v11, %v2247_v59  ;;  %v2444_v30 = vmul.f32 %v2442_v19, %v2247_v59 }
 0xef6   : > { %v2279_v37 = vadd.f32 %v2276_v16, %v2273_v18  ;;  %v2278_v52 = vadd.f32 %v2276_v16, %v2272_v10  ;;  %v2250_v10 = vand.u32 127, %v1334_v13 }
 0xef8   : > { %2289 = vrot.lane.b32.xlu0 %v2285_v12, %s3302_s24  ;;  %v2255_v11 = vand.u32 1, %v2250_v10  ;;  %vm2264_vm14 = vcmp.lt.s32.totalorder %v2250_v10, 30 }
 0xef9   : > { %2503 = vrot.lane.b32.xlu1 %v2498_v15, %s3302_s24 }
 0xefa   : > { %vm2263_vm13 = vcmp.eq.s32.totalorder %v2255_v11, 0 }
 0xefb   : > { %vm3857_vm0 = vmand %vm2263_vm13, %vm2264_vm14 }
 0xefc   : > { %2308 = vrot.lane.b32.xlu0 %v2303_v20, %s3303_s23 }
 0xefd   : > { %2450 = vrot.lane.b32.xlu1 %v2445_v23, %s3303_s23 }
 0xf00   : > { %2380 = vrot.lane.b32.xlu0 %v2375_v24, %s3303_s23 }
 0xf01   : > { %2378 = vrot.lane.b32.xlu1 %v2374_v25, %s3303_s23 }
 0xf04   : > { %2431 = vrot.lane.b32.xlu0 %v2427_v26, %s3302_s24 }
 0xf05   : > { %2520 = vrot.lane.b32.xlu1 %v2515_v7, %s3303_s23 }
 0xf08   : > { %2306 = vrot.lane.b32.xlu0 %v2302_v27, %s3303_s23 }
 0xf09   : > { %2518 = vrot.lane.b32.xlu1 %v2514_v28, %s3303_s23 }
 0xf0c   : > { %2501 = vrot.lane.b32.xlu0 %v2497_v29, %s3302_s24 }
 0xf10   : > { %2448 = vrot.lane.b32.xlu0 %v2444_v30, %s3303_s23 }
 0xf62   : > { %v2364_v17 = vpop.permute.xlu0 %2363 }
 0xf63   : > { %v2292_v31 = vpop.permute.xlu1 %2291  ;;  %v2368_v43 = vadd.f32 %v2364_v17, %v2351_v60 }
 0xf64   : > { %v2296_v39 = vadd.f32 %v2292_v31, %v2279_v37 }
 0xf66   : > { %v2434_v32 = vpop.permute.xlu0 %2433 }
 0xf67   : > { %v2362_v34 = vpop.permute.xlu1 %2361  ;;  %v2438_v42 = vadd.f32 %v2434_v32, %v2421_v61 }
 0xf68   : > { %v2367_v48 = vadd.f32 %v2362_v34, %v2350_v6 }
 0xf6a   : > { %v2290_v22 = vpop.permute.xlu0 %2289 }
 0xf6b   : > { %v2504_v40 = vpop.permute.xlu1 %2503  ;;  %v2295_v53 = vadd.f32 %v2290_v22, %v2278_v52 }
 0xf6c   : > { %v2508_v38 = vadd.f32 %v2504_v40, %v3816_v62 }
 0xf6e   : > { %v2309_v55 = vpop.permute.xlu0 %2308 }
 0xf6f   : > { %v2313_v41 = vadd.f32 %v2309_v55, %v2296_v39  ;;  %v2451_v56 = vpop.permute.xlu1 %2450 }
 0xf70   : > { %v2455_v45 = vadd.f32 %v2451_v56, %v2438_v42 }
 0xf71   : > { %v2315_v44 = vmax.f32 %v2313_v41, 0.0 }
 0xf72   : > { %v2381_v46 = vpop.permute.xlu0 %2380  ;;  %v2457_v49 = vmax.f32 %v2455_v45, 0.0  ;;  %v3304_v45 = vmov 0.0  }
 0xf73   : > { %v2385_v47 = vadd.f32 %v2381_v46, %v2368_v43  ;;  %2320 = vrot.lane.b32.xlu0 %v2315_v44, %s3302_s24  ;;  %v2379_v50 = vpop.permute.xlu1 %2378  ;;  %3115 = vmatprep.subr.bf16.mxu0 %v3304_v45 }
 0xf74   : > { %v2384_v36 = vadd.f32 %v2379_v50, %v2367_v48  ;;  %3117 = vmatprep.mubr.msk.bf16.mxu0 %vm3305_vm3, %v3304_v45  ;;  %3121 = vmatprep.subr.bf16.mxu1 %v3304_v45 }
 0xf75   : > { %v2387_v33 = vmax.f32 %v2385_v47, 0.0  ;;  %3123 = vmatprep.mubr.msk.bf16.mxu1 %vm3305_vm3, %v3304_v45 }
 0xf76   : > { %v2432_v51 = vpop.permute.xlu0 %2431  ;;  %v2386_v54 = vmax.f32 %v2384_v36, 0.0 }
 0xf77   : > { %2462 = vrot.lane.b32.xlu0 %v2457_v49, %s3302_s24  ;;  %2392 = vrot.lane.b32.xlu1 %v2387_v33, %s3302_s24  ;;  %v2521_v57 = vpop.permute.xlu1 %2520  ;;  %v2437_v4 = vadd.f32 %v2432_v51, %v3822_v8 }
 0xf78   : > { %v2525_v60 = vadd.f32 %v2521_v57, %v2508_v38 }
 0xf7a   : > { %v2307_v58 = vpop.permute.xlu0 %2306  ;;  %v2527_v3 = vmax.f32 %v2525_v60, 0.0  ;;  %v2614_v60 = vld [vmem:[%s3998_s1 + $0x8] sm:$0xff] }
 0xf7b   : > { %v2312_v59 = vadd.f32 %v2307_v58, %v2295_v53  ;;  %2390 = vrot.lane.b32.xlu0 %v2386_v54, %s3302_s24  ;;  %v2519_v2 = vpop.permute.xlu1 %2518 }
 0xf7d   : > { %v2314_v61 = vmax.f32 %v2312_v59, 0.0  ;;  %v2613_v59 = vld [vmem:[%s3997_s29] sm:$0xff] }
 0xf7e   : > { %v2502_v63 = vpop.permute.xlu0 %2501 }
 0xf7f   : > { %v2507_v0 = vadd.f32 %v2502_v63, %v3825_v9  ;;  %2318 = vrot.lane.b32.xlu1 %v2314_v61, %s3302_s24  ;;  %v2668_v63 = vld [vmem:[%s3999_s6] sm:$0xff] }
 0xf81   : > { %v2524_v5 = vadd.f32 %v2519_v2, %v2507_v0  ;;  %v2670_v0 = vpack.c.bf16 %v2668_v63, %v2668_v63 }
 0xf82   : > { %v2449_v35 = vpop.permute.xlu0 %2448 }
 0xf83   : > { %v2454_v6 = vadd.f32 %v2449_v35, %v2437_v4  ;;  %2532 = vrot.lane.b32.xlu1 %v2527_v3, %s3302_s24  ;;  %v2526_v62 = vmax.f32 %v2524_v5, 0.0  ;;  %v2682_v2 = vsel %vm1549_vm11, %v2670_v0, 0 }
 0xf85   : > { %v2456_v18 = vmax.f32 %v2454_v6, 0.0 }
 0xf87   : > { %2460 = vrot.lane.b32.xlu0 %v2456_v18, %s3302_s24  ;;  %2530 = vrot.lane.b32.xlu1 %v2526_v62, %s3302_s24  ;;  %s4001_s24 = sld [smem:[#allocation19_spill]] }
 0xfe5   : > { %v2321_v9 = vpop.permute.xlu0 %2320 }
 0xfe6   : > { %v2325_v19 = vmax.f32 %v2315_v44, %v2321_v9  ;;  %v2554_v44 = vld [vmem:[%s3949_s19] sm:$0xf] }
 0xfe7   : > { %v2556_v46 = vpack.c.bf16 %v2554_v44, %v2554_v44  ;;  %v2923_v9 = vld [vmem:[%s4001_s24] ss:$0 sm:$0xff] }
 0xfe8   : > { %v2328_v26 = vrot.slane %v2325_v19, 7 }
 0xfe9   : > { %v2393_v12 = vpop.permute.xlu1 %2392  ;;  %v2463_v14 = vpop.permute.xlu0 %2462  ;;  %v2570_v47 = vsel %vm2568_vm2, %v2556_v46, 0 }
 0xfea   : > { %v2397_v15 = vmax.f32 %v2387_v33, %v2393_v12  ;;  %v2467_v30 = vmax.f32 %v2457_v49, %v2463_v14  ;;  %3116 = vmatpush3.bf16.msra.mxu0 %v2570_v47 }
 0xfeb   : > { %3127 = vmatprep.subr.bf16.mxu0 %v3304_v45 }
 0xfec   : > { %v2400_v20 = vrot.slane %v2397_v15, 7  ;;  %v2470_v16 = vrot.slane %v2467_v30, 7 }
 0xfed   : > { %v2391_v8 = vpop.permute.xlu0 %2390 }
 0xfee   : > { %v2396_v21 = vmax.f32 %v2386_v54, %v2391_v8 }
 0xff0   : > { %v2401_v24 = vsel %vm2329_vm15, %v2400_v20, %v2396_v21  ;;  %v2925_v21 = vld [vmem:[%s4002_s20] ss:$0 sm:$0xff] }
 0xff1   : > { %v2319_v13 = vpop.permute.xlu1 %2318  ;;  %v2403_v25 = vsel %vm3857_vm0, %v2401_v24, 0.0 }
 0xff2   : > { %v2324_v1 = vmax.f32 %v2314_v61, %v2319_v13  ;;  %v2404_v7 = vsel %vm2333_vm1, %v2403_v25, 0.0  ;;  %v2616_v61 = vpack.c.bf16 %v2614_v60, %v2613_v59 }
 0xff3   : > { %2405 = vadd.xlane.f32.xlu1 %v2404_v7 }
 0xff4   : > { %v2330_v27 = vsel %vm2329_vm15, %v2328_v26, %v2324_v1  ;;  %3122 = vmatpush3.bf16.msra.mxu1 %v2616_v61 }
 0xff5   : > { %v2533_v28 = vpop.permute.xlu1 %2532  ;;  %v2332_v29 = vsel %vm3857_vm0, %v2330_v27, 0.0 }
 0xff6   : > { %v2537_v17 = vmax.f32 %v2527_v3, %v2533_v28  ;;  %v2334_v31 = vsel %vm2333_vm1, %v2332_v29, 0.0  ;;  %v2921_v3 = vld [vmem:[%s4000_s25] ss:$0 sm:$0xff] }
 0xff7   : > { %2335 = vadd.xlane.f32.xlu0 %v2334_v31 }
 0xff8   : > { %v2540_v22 = vrot.slane %v2537_v17, 7 }
 0xff9   : > { %v2461_v32 = vpop.permute.xlu0 %2460  ;;  %v2531_v34 = vpop.permute.xlu1 %2530 }
 0xffa   : > { %v2466_v37 = vmax.f32 %v2456_v18, %v2461_v32  ;;  %v2536_v39 = vmax.f32 %v2526_v62, %v2531_v34 }
 0xffc   : > { %v2471_v40 = vsel %vm2329_vm15, %v2470_v16, %v2466_v37  ;;  %v2541_v55 = vsel %vm2329_vm15, %v2540_v22, %v2536_v39 }
 0xffd   : > { %v2473_v41 = vsel %vm3857_vm0, %v2471_v40, 0.0  ;;  %v2543_v43 = vsel %vm3857_vm0, %v2541_v55, 0.0 }
 0xffe   : > { %v2474_v42 = vsel %vm2333_vm1, %v2473_v41, 0.0  ;;  %v2544_v56 = vsel %vm2333_vm1, %v2543_v43, 0.0 }
 0xfff   : > { %2475 = vadd.xlane.f32.xlu0 %v2474_v42 }
0x1003   : > { %2545 = vadd.xlane.f32.xlu0 %v2544_v56 }
0x1080   : > { %v2406_v49 = vpop.xlane.xlu1 %2405 }
0x1081   : > { %v2407_v51 = vmul.f32 0.06666667, %v2406_v49 }
0x1084   : > { %v2336_v48 = vpop.xlane.xlu0 %2335 }
0x1085   : > { %v2337_v33 = vmul.f32 0.06666667, %v2336_v48 }
0x1087   : > { %v2549_v53 = vsel %vm2548_vm4, %v2337_v33, %v2407_v51 }
0x108c   : > { %v2476_v50 = vpop.xlane.xlu0 %2475 }
0x108d   : > { %v2477_v36 = vmul.f32 0.06666667, %v2476_v50 }
0x108f   : > { %v2551_v57 = vsel %vm2550_vm5, %v2549_v53, %v2477_v36 }
0x1090   : > { %v2546_v52 = vpop.xlane.xlu0 %2545 }
0x1091   : > { %v2547_v54 = vmul.f32 0.06666667, %v2546_v52 }
0x1093   : > { %v2553_v58 = vsel %vm2552_vm6, %v2551_v57, %v2547_v54 }
0x1094   : > { %v2555_v38 = vpack.c.bf16 %v2553_v58, %v2553_v58 }
0x1096   : > { %3118 = vmatmul.mubr.msk.bf16.vlgmr.msra.gmra.mrb[0].mxu0 %vm2564_vm7, %v2555_v38 }
0x1097   : > { %3129 = vmatprep.mubr.msk.bf16.mxu0 %vm3305_vm3, %v3304_v45  ;;  %3128 = vmatpush3.bf16.msra.mxu0 %v2682_v2 }
0x1169   : > { %v2606_v4 = vpop.f32.mrb[0].mxu0 }
0x116a   : > { %v2607_v5 = vadd.f32 %v2921_v3, %v2606_v4  ;;  %v3119_v35 = vpop.f32.mrb[1].mxu0 }
0x116b   : > { %v2609_v6 = vpop.f32.mrb[2].mxu0 }
0x116c   : > { %v2612_v62 = vmax.f32 %v2607_v5, 0.0  ;;  %v3120_v18 = vpop.f32.mrb[3].mxu0 }
0x116e   : > { %v2615_v10 = vpack.c.bf16 %v2612_v62, %v2612_v62 }
0x1170   : > { %3124 = vmatmul.mubr.msk.bf16.vlgmr.msra.gmra.mrb[0].mxu1 %vm1423_vm9, %v2615_v10 }
0x1243   : > { %v2661_v11 = vpop.f32.mrb[0].mxu1 }
0x1244   : > { %v2662_v12 = vadd.f32 %v2923_v9, %v2661_v11  ;;  %v3125_v14 = vpop.f32.mrb[1].mxu1 }
0x1245   : > { %v2664_v15 = vpop.f32.mrb[2].mxu1 }
0x1246   : > { %v2667_v8 = vmax.f32 %v2662_v12, 0.0  ;;  %v3126_v19 = vpop.f32.mrb[3].mxu1 }
0x1248   : > { %v2669_v20 = vpack.c.bf16 %v2667_v8, %v2667_v8 }
0x124a   : > { %3130 = vmatmul.mubr.msk.bf16.vlgmr.msra.gmra.mrb[4].mxu0 %vm1519_vm10, %v2669_v20 }
0x131d   : > { %v2718_v23 = vpop.f32.mrb[4].mxu0 }
0x131e   : > { %v2719_v24 = vadd.f32 %v2925_v21, %v2718_v23  ;;  %v3131_v13 = vpop.f32.mrb[5].mxu0 }
0x131f   : > { %v2721_v25 = vpop.f32.mrb[6].mxu0 }
0x1320   : > { %2725 = vst.msk [vmem:[#allocation3] sm:$0x3] %vm2724_vm8, %v2719_v24  ;;  %v3132_v26 = vpop.f32.mrb[7].mxu0 }
0x1321 PF: > { %p3169_p6 = scmp.eq.s32.totalorder %s3443_s2, 1  ;;  %s3306_s29 = smov [#allocation3]  }
0x1322   : > { %s2733_s28 = sshll.u32 %s3306_s29, 4  ;;  %s2734_s28 = int_to_ptr.vmem [resolvable:$true] %s2733_s28 }
0x1323   : > { %s3255_s22 = scalar_lea.vmem %s2734_s28, 32  ;;  %p3262_p10 = scmp.lt.s32.totalorder %s2734_s28, %s2734_s28 }
0x1324   : > { %p3256_p7 = scmp.ne.s32.totalorder %s2734_s28, %s3255_s22  ;;  %p3263_p11 = scmp.lt.s32.totalorder %s3255_s22, %s3255_s22 }
0x1326   : > { %p3257_p8 = pnand %p3256_p7, %p3169_p6  ;;  %p3264_p12 = por %p3263_p11, %p3262_p10 }
0x1328   : > { %p3258_p9 = pneg %p3257_p8 }
0x132a   : > { %p3265_p13 = pnand %p3264_p12, %p3258_p9 }
0x132c   : > { %3268 = shalt.err (!%p3265_p13)
}
0x132d   : > { %s4003_s6 = sld [smem:[#allocation22_spill]] }
0x1333   : > { %s3269_s21 = scalar_lea.hbm %s4003_s6, 32 }
0x1334   : > { %p3270_p0 = scmp.ne.s32.totalorder %s4003_s6, %s3269_s21  ;;  %p3275_p3 = scmp.lt.u32.totalorder %s3269_s21, %s4003_s6 }
0x1336   : > { %p3271_p1 = pnand %p3270_p0, %p3169_p6 }
0x1338   : > { %p3272_p2 = pneg %p3271_p1 }
0x133a   : > { %p3277_p4 = pnand %p3275_p3, %p3272_p2 }
0x133c   : > { %3280 = shalt.err (!%p3277_p4)
}
0x133d   : > { %3166 = dma.vmem_to_hbm [thread:$0]  (%p3169_p6), %s2734_s28, 32, %s4003_s6, [#allocation4]  }
0x133e   : > { %3286 = dma.done.wait (%p3169_p6), [#allocation4], 32  }
0x133f   : > { %3288 = vsyncadd (%p3169_p6), [#allocation4], 4294967264 }
0x1340 PF: > { %s4004_s4 = sld [smem:[#allocation6_spill]] }
0x1346   : > { %s36_s29 = sadd.s32 1, %s4004_s4  }
0x1347   : > { %p33_p5 = scmp.ge.s32.totalorder %s36_s29, 4  }
0x1349   :  { %35 = sbr.rel (!%p33_p5) target bundleno = 18 (0x12), region = 181 }
0x1350   :  { %2746 = vsyncpa [#allocation4], 1 }
0x1351   :  { %2748 = vsyncpa [#allocation4 + $0x1], 1 }

</bundles_post_ra>
